<compile_context>
chip_gen: v5e
topology: v5e:2x2
jax: 0.10.0
libtpu: 0.0.40
codegen_flags: <defaults>
</compile_context>

<pallas_src>
import jax
import jax.numpy as jnp
import numpy as np
from jax.experimental import pallas as pl
from jax.experimental.pallas import tpu as pltpu

_INV_SQRT2 = 0.7071067811865476
_COMPUTE_DTYPE = jnp.bfloat16          # MXU-native on v5e/v6e/v7x


# ----------------------------- helpers -------------------------------------

def _round_up(x, m):
    return ((x + m - 1) // m) * m


def _vmem_budget():
    """Per-core VMEM limit: physical capacity minus ~15% for Mosaic scratch."""
    phys = 128 * 1024 * 1024
    try:
        info = pltpu.get_tpu_info()
        phys = int(getattr(info, "vmem_capacity_bytes", phys) or phys)
    except Exception:
        pass
    return int(phys * 0.85)


def _pick_ffn_tiles(N, H, I, in_bytes, out_bytes, vmem_budget):
    """Choose (tn, ti).  Prefer ti == I (single k step -> weight blocks stay
    resident across consecutive same-expert token tiles, no re-DMA), then the
    largest token tile tn that fits the VMEM budget."""
    wbytes = jnp.dtype(_COMPUTE_DTYPE).itemsize

    def usage(tn, ti):
        return (2 * tn * H * in_bytes        # x tile, double-buffered
                + 2 * tn * H * out_bytes     # out tile, double-buffered
                + tn * H * 4                 # f32 accumulator scratch
                + 4 * H * ti * wbytes        # W1 + W2 tiles, double-buffered
                + 2 * tn * 4)                # routing-score tile

    ti_cands = [I] + [t for t in (4096, 2048, 1024, 512, 256, 128)
                      if t < I and I % t == 0]
    tn_cap = max(128, min(2048, _round_up(N, 128)))   # no point exceeding ~N
    tn_cands = [t for t in (2048, 1024, 512, 256) if t <= tn_cap]

    for ti in ti_cands:
        for tn in tn_cands:
            if usage(tn, ti) <= vmem_budget:
                return tn, ti
    for ti in ti_cands:
        if usage(128, ti) <= vmem_budget:
            return 128, ti
    return 128, ti_cands[-1]


# ----------------------------- gate (router logits) ------------------------

def _gate_kernel(x_ref, wg_ref, o_ref):
    # (tn, H) @ (H, E_pad) -> (tn, E_pad), lane-dense output (E padded to 128).
    o_ref[...] = jnp.dot(x_ref[...], wg_ref[...],
                         preferred_element_type=jnp.float32)


def _gate_logits_pallas(x_flat, wg_t, vmem_limit):
    N, H = x_flat.shape
    E = wg_t.shape[1]
    e_pad = _round_up(E, 128)
    tn = 512
    while tn > 128 and (2 * tn * H * 2 + 2 * H * e_pad * 2
                        + 2 * tn * e_pad * 4) > int(vmem_limit * 0.9):
        tn //= 2
    n_pad = _round_up(N, tn)

    xb = x_flat.astype(_COMPUTE_DTYPE)
    if n_pad != N:
        xb = jnp.zeros((n_pad, H), xb.dtype).at[:N].set(xb)
    wg_p = jnp.zeros((H, e_pad), _COMPUTE_DTYPE).at[:, :E].set(
        wg_t.astype(_COMPUTE_DTYPE))

    out = pl.pallas_call(
        _gate_kernel,
        out_shape=jax.ShapeDtypeStruct((n_pad, e_pad), jnp.float32),
        grid=(n_pad // tn,),
        in_specs=[
            pl.BlockSpec((tn, H), lambda i: (i, 0)),
            pl.BlockSpec((H, e_pad), lambda i: (0, 0)),   # weight stays resident
        ],
        out_specs=pl.BlockSpec((tn, e_pad), lambda i: (i, 0)),
        compiler_params=pltpu.CompilerParams(
            dimension_semantics=("parallel",),
            vmem_limit_bytes=vmem_limit,
        ),
    )(xb, wg_p)
    return out[:N, :E]


def gate_logits(x_flat, wg_t, vmem_limit):
    E = wg_t.shape[1]
    if E < 64:
        # Small E: a dedicated pallas_call (E lane-padded to 128) wastes MXU
        # work and a kernel round trip; let XLA fuse the tiny router matmul.
        return jnp.dot(x_flat, wg_t, preferred_element_type=jnp.float32)
    return _gate_logits_pallas(x_flat, wg_t, vmem_limit)


# ----------------------------- grouped expert FFN --------------------------

def _ffn_kernel(tile_expert_ref, tile_valid_ref,
                x_ref, s_ref, w1_ref, w2_ref, o_ref, acc_ref):
    t = pl.program_id(0)
    k = pl.program_id(1)
    nk = pl.num_programs(1)
    valid = tile_valid_ref[t] != 0

    @pl.when(valid)
    def _compute():
        # (tn, H)bf16 @ (H, ti)bf16 -> f32
        h = jnp.dot(x_ref[...], w1_ref[...], preferred_element_type=jnp.float32)
        # exact (erf-based) GELU, matching torch.nn.GELU(approximate='none')
        h = 0.5 * h * (1.0 + jax.lax.erf(h * _INV_SQRT2))
        y = jnp.dot(h.astype(w2_ref.dtype), w2_ref[...],
                    preferred_element_type=jnp.float32)

        @pl.when(k == 0)
        def _init():
            acc_ref[...] = y

        @pl.when(k > 0)
        def _accum():
            acc_ref[...] += y

        @pl.when(k == nk - 1)
        def _finalize():
            # routing score applied in-kernel; store directly in x.dtype
            o_ref[...] = (acc_ref[...] * s_ref[...]).astype(o_ref.dtype)

    @pl.when(jnp.logical_and(jnp.logical_not(valid), k == nk - 1))
    def _pad_tile():
        o_ref[...] = jnp.zeros_like(o_ref)


def moe_ffn_grouped(x_packed, score_packed, w1_t, w2_t,
                    tile_expert, tile_valid, tn, ti, out_dtype, vmem_limit):
    """Routing-aware grouped expert FFN over expert-packed token tiles."""
    n_pad, H = x_packed.shape
    E, _, I = w1_t.shape
    T = n_pad // tn
    nk = I // ti

    if nk == 1:
        def w_k(t, k):
            return 0
    else:
        # serpentine k ordering: reverse direction on odd token tiles so only
        # one of the two weight slices changes at each tile boundary.
        def w_k(t, k):
            return jnp.where((t % 2) == 0, k, nk - 1 - k)

    grid_spec = pltpu.PrefetchScalarGridSpec(
        num_scalar_prefetch=2,
        grid=(T, nk),
        in_specs=[
            pl.BlockSpec((tn, H), lambda t, k, te, tv: (t, 0)),
            pl.BlockSpec((tn, 1), lambda t, k, te, tv: (t, 0)),
            pl.BlockSpec((pl.Squeezed(), H, ti),
                         lambda t, k, te, tv: (te[t], 0, w_k(t, k))),
            pl.BlockSpec((pl.Squeezed(), ti, H),
                         lambda t, k, te, tv: (te[t], w_k(t, k), 0)),
        ],
        out_specs=pl.BlockSpec((tn, H), lambda t, k, te, tv: (t, 0)),
        scratch_shapes=[pltpu.VMEM((tn, H), jnp.float32)],
    )
    # NOTE: if xprof ever shows exposed weight DMA at expert switches, add
    # pipeline_mode=pl.Buffered(3) on the two weight BlockSpecs (VMEM permitting).
    return pl.pallas_call(
        _ffn_kernel,
        out_shape=jax.ShapeDtypeStruct((n_pad, H), out_dtype),
        grid_spec=grid_spec,
        compiler_params=pltpu.CompilerParams(
            dimension_semantics=("parallel", "arbitrary"),
            vmem_limit_bytes=vmem_limit,
        ),
    )(tile_expert, tile_valid,
      x_packed.astype(_COMPUTE_DTYPE), score_packed,
      w1_t.astype(_COMPUTE_DTYPE), w2_t.astype(_COMPUTE_DTYPE))


# --------------------------- routing (JAX glue) -----------------------------

def _route(logits, capacity_factor):
    """Expert-choice routing, mirroring the PyTorch double loop exactly:
    single assignment per token, strictly-greater overwrite (ties -> lowest
    expert index), softmax-argmax fallback, raw-logit score."""
    N, E = logits.shape
    k = max(1, int(N * capacity_factor / E))
    k = min(k, N)

    affinities = logits.T                                    # [E, N]
    _, sel_idx = jax.lax.top_k(affinities, k)                # [E, k]
    selected = (
        jnp.zeros((E, N), dtype=bool)
        .at[jnp.arange(E)[:, None], sel_idx]
        .set(True)
        .T                                                   # [N, E]
    )

    masked = jnp.where(selected, logits, -jnp.inf)
    any_selected = jnp.any(selected, axis=1)
    assign_sel = jnp.argmax(masked, axis=1)
    assign_fb = jnp.argmax(logits, axis=1)                   # argmax softmax == argmax logits
    assign = jnp.where(any_selected, assign_sel, assign_fb).astype(jnp.int32)
    score = jnp.take_along_axis(logits, assign[:, None], axis=1)[:, 0]
    return assign, score


def _pack_by_expert(x_flat, score, assign, num_experts, tn):
    """Pack tokens into tile-aligned (tn) per-expert groups via gathers only.

    Returns (x_packed[n_pad,H] bf16, score_packed[n_pad,1] f32, dest[N],
    tile_expert[T], tile_valid[T], counts[E])."""
    N, H = x_flat.shape
    E = num_experts
    T = N // tn + E                        # static upper bound on #tiles
    n_pad = T * tn

    counts = jnp.bincount(assign, length=E).astype(jnp.int32)
    padded_counts = ((counts + tn - 1) // tn) * tn
    starts_pack = jnp.concatenate(
        [jnp.zeros((1,), jnp.int32), jnp.cumsum(padded_counts)[:-1]])
    ends_pack = starts_pack + padded_counts
    starts_sorted = jnp.concatenate(
        [jnp.zeros((1,), jnp.int32), jnp.cumsum(counts)[:-1]])
    total_packed = jnp.sum(padded_counts)

    # token -> packed row (no N*H scatter; only gathers below)
    order = jnp.argsort(assign).astype(jnp.int32)            # expert-sorted token ids
    inv_order = jnp.argsort(order).astype(jnp.int32)
    sorted_assign = assign[order]
    rank = jnp.arange(N, dtype=jnp.int32) - starts_sorted[sorted_assign]
    dest_sorted = starts_pack[sorted_assign] + rank
    dest = dest_sorted[inv_order]                            # [N] packed row per token

    # packed row -> source token (padding rows point at an extra zero row)
    p = jnp.arange(n_pad, dtype=jnp.int32)
    e_of_p = jnp.minimum(
        jnp.sum((p[:, None] >= ends_pack[None, :]).astype(jnp.int32), axis=1), E - 1)
    r = p - starts_pack[e_of_p]
    is_real = (r < counts[e_of_p]) & (p < total_packed)
    sorted_pos = jnp.clip(starts_sorted[e_of_p] + r, 0, N - 1)
    src_idx = jnp.where(is_real, order[sorted_pos], N)

    x_ext = jnp.concatenate(
        [x_flat.astype(_COMPUTE_DTYPE), jnp.zeros((1, H), _COMPUTE_DTYPE)], axis=0)
    s_ext = jnp.concatenate(
        [score.astype(jnp.float32), jnp.zeros((1,), jnp.float32)], axis=0)
    x_packed = jnp.take(x_ext, src_idx, axis=0)              # [n_pad, H] bf16
    score_packed = jnp.take(s_ext, src_idx, axis=0)[:, None]  # [n_pad, 1] f32

    # per-tile expert id and validity flag (scalar-prefetched into SMEM)
    tile_start = jnp.arange(T, dtype=jnp.int32) * tn
    tile_eid = jnp.minimum(
        jnp.sum((tile_start[:, None] >= ends_pack[None, :]).astype(jnp.int32),
                axis=1),
        E - 1)
    tile_valid = (tile_start < total_packed).astype(jnp.int32)
    # invalid (all-padding) tiles reuse the last valid tile's expert so their
    # (skipped) weight blocks don't trigger a fresh DMA.
    last_valid_expert = jnp.max(
        jnp.where(counts > 0, jnp.arange(E, dtype=jnp.int32), 0))
    tile_expert = jnp.where(tile_valid > 0, tile_eid,
                            last_valid_expert).astype(jnp.int32)

    return x_packed, score_packed, dest, tile_expert, tile_valid, counts


# ------------------------------ forward -------------------------------------

def expert_choice_moe_forward(x, params, capacity_factor=1.0):
    B, S, H = x.shape
    wg_t, w1_t, w2_t = params["wg_t"], params["w1_t"], params["w2_t"]
    E, _, I = w1_t.shape
    N = B * S
    x_flat = x.reshape(N, H)

    vmem_limit = _vmem_budget()

    # 1) router logits (Pallas kernel for large E, fused XLA matmul for small E)
    logits = gate_logits(x_flat, wg_t, vmem_limit)           # [N, E] f32

    # 2) expert-choice routing (control-flow-heavy glue stays in plain JAX)
    assign, score = _route(logits, capacity_factor)

    # 3) pack tokens into tile-aligned per-expert groups
    tn, ti = _pick_ffn_tiles(N, H, I,
                             in_bytes=jnp.dtype(_COMPUTE_DTYPE).itemsize,
                             out_bytes=jnp.dtype(x.dtype).itemsize,
                             vmem_budget=int(vmem_limit * 0.9))
    (x_packed, score_packed, dest,
     tile_expert, tile_valid, counts) = _pack_by_expert(x_flat, score, assign, E, tn)

    # 4) grouped expert FFN kernel (score applied in-kernel, output in x.dtype)
    y_packed = moe_ffn_grouped(x_packed, score_packed, w1_t, w2_t,
                               tile_expert, tile_valid, tn, ti,
                               out_dtype=x.dtype, vmem_limit=vmem_limit)

    # 5) un-pack back to token order
    out = jnp.take(y_packed, dest, axis=0).reshape(B, S, H)
    # TODO(synk): nn.Dropout(expert_dropout=0.0) is identity; no dropout applied.

    aux = {
        "router_logits": logits,
        "expert_indices": assign.reshape(B, S),
        "routing_weights": score.astype(x.dtype).reshape(B, S),
        "expert_counts": counts.astype(jnp.float32),   # functional buffer update
        "aux_loss": jnp.zeros((), dtype=x.dtype),
    }
    return out, aux


# ------------------------------ reference -----------------------------------

def _ref_output_from_routing(x, params, assign, score):
    """Dense f32 JAX reference for the expert FFN + combine, given routing."""
    B, S, H = x.shape
    w1_t, w2_t = params["w1_t"], params["w2_t"]
    N = B * S
    xf = x.reshape(N, H)
    h = jnp.einsum("nh,ehi->eni", xf, w1_t)
    h = 0.5 * h * (1.0 + jax.lax.erf(h * _INV_SQRT2))
    y = jnp.einsum("eni,eih->enh", h, w2_t)                  # [E, N, H]
    y_sel = y[assign, jnp.arange(N)]                         # [N, H]
    return (y_sel * score[:, None]).reshape(B, S, H)


# --------------------------------- main --------------------------------------

if __name__ == "__main__":
    B, S, H, I, E = 2, 8, 32, 64, 4
    capacity_factor = 1.0

    key = jax.random.PRNGKey(0)
    kx, kg, k1, k2 = jax.random.split(key, 4)
    x = jax.random.normal(kx, (B, S, H), dtype=jnp.float32)
    params = {
        "wg_t": jax.random.normal(kg, (H, E), dtype=jnp.float32) / np.sqrt(H),
        "w1_t": jax.random.normal(k1, (E, H, I), dtype=jnp.float32) / np.sqrt(H),
        "w2_t": jax.random.normal(k2, (E, I, H), dtype=jnp.float32) / np.sqrt(I),
    }

    fwd = jax.jit(expert_choice_moe_forward, static_argnames=("capacity_factor",))
    out, aux = fwd(x, params, capacity_factor=capacity_factor)
    out = jax.block_until_ready(out)

    # sanity checks against a plain-JAX f32 reference (loose tol: bf16 MXU FFN)
    logits_ref = x.reshape(-1, H) @ params["wg_t"]
    np.testing.assert_allclose(
        np.asarray(aux["router_logits"]), np.asarray(logits_ref),
        rtol=1e-2, atol=1e-2)

    assign = jnp.asarray(np.asarray(aux["expert_indices"]).reshape(-1))
    score = jnp.asarray(np.asarray(aux["routing_weights"]).reshape(-1))
    out_ref = _ref_output_from_routing(x, params, assign, score)
    np.testing.assert_allclose(
        np.asarray(out), np.asarray(out_ref), rtol=2e-2, atol=3e-2)

    print("KERNEL_OK")
</pallas_src>

<mosaic_0001>
module attributes {stable_mosaic.version = 11 : i64} {
  func.func @_ffn_kernel(%arg0: i32, %arg1: i32, %arg2: memref<4xi32, #tpu.memory_space<smem>>, %arg3: memref<4xi32, #tpu.memory_space<smem>>, %arg4: memref<128x32xbf16, #tpu.memory_space<vmem>>, %arg5: memref<128x1xf32, #tpu.memory_space<vmem>>, %arg6: memref<1x32x64xbf16, #tpu.memory_space<vmem>>, %arg7: memref<1x64x32xbf16, #tpu.memory_space<vmem>>, %arg8: memref<128x32xf32, #tpu.memory_space<vmem>>, %arg9: memref<128x32xf32, #tpu.memory_space<vmem>>) attributes {dimension_semantics = [#tpu.dimension_semantics<parallel>, #tpu.dimension_semantics<arbitrary>], iteration_bounds = array<i64: 4, 1>, scalar_prefetch = 2 : i64, scratch_operands = 1 : i64, tpu.core_type = #tpu.core_type<tc>, window_params = [{transform_indices = @transform_0, window_bounds = array<i64: 128, 32>}, {transform_indices = @transform_1, window_bounds = array<i64: 128, 1>}, {transform_indices = @transform_2, window_bounds = array<i64: 1, 32, 64>}, {transform_indices = @transform_3, window_bounds = array<i64: 1, 64, 32>}, {transform_indices = @transform_4, window_bounds = array<i64: 128, 32>}]} {
    %0 = arith.index_cast %arg0 : i32 to index
    %1 = memref.load %arg3[%0] : memref<4xi32, #tpu.memory_space<smem>>
    %c0_i32 = arith.constant 0 : i32
    %2 = arith.cmpi ne, %1, %c0_i32 : i32
    %3 = arith.extui %2 : i1 to i32
    %c0_i32_0 = arith.constant 0 : i32
    %4 = arith.cmpi ne, %3, %c0_i32_0 : i32
    scf.if %4 {
      %c0 = arith.constant 0 : index
      %c0_3 = arith.constant 0 : index
      %10 = vector.load %arg4[%c0, %c0_3] : memref<128x32xbf16, #tpu.memory_space<vmem>>, vector<128x32xbf16>
      %c0_4 = arith.constant 0 : index
      %c0_5 = arith.constant 0 : index
      %c0_6 = arith.constant 0 : index
      %11 = vector.load %arg6[%c0_4, %c0_5, %c0_6] : memref<1x32x64xbf16, #tpu.memory_space<vmem>>, vector<1x32x64xbf16>
      %12 = vector.shape_cast %11 : vector<1x32x64xbf16> to vector<32x64xbf16>
      %cst = arith.constant dense<0.000000e+00> : vector<128x64xf32>
      %13 = tpu.matmul %10, %12, %cst {dimension_numbers = #tpu.dot_dimension_numbers<[1], [0], [0], [1], [0, 0, 1, 1], [], []>} : vector<128x32xbf16>, vector<32x64xbf16>, vector<128x64xf32> -> vector<128x64xf32>
      %cst_7 = arith.constant 5.000000e-01 : f32
      %14 = vector.broadcast %cst_7 : f32 to vector<128x64xf32>
      %15 = arith.mulf %14, %13 : vector<128x64xf32>
      %cst_8 = arith.constant 0.707106769 : f32
      %16 = vector.broadcast %cst_8 : f32 to vector<128x64xf32>
      %17 = arith.mulf %13, %16 : vector<128x64xf32>
      %18 = math.erf %17 : vector<128x64xf32>
      %cst_9 = arith.constant 1.000000e+00 : f32
      %19 = vector.broadcast %cst_9 : f32 to vector<128x64xf32>
      %20 = arith.addf %19, %18 : vector<128x64xf32>
      %21 = arith.mulf %15, %20 : vector<128x64xf32>
      %22 = arith.truncf %21 : vector<128x64xf32> to vector<128x64xbf16>
      %c0_10 = arith.constant 0 : index
      %c0_11 = arith.constant 0 : index
      %c0_12 = arith.constant 0 : index
      %23 = vector.load %arg7[%c0_10, %c0_11, %c0_12] : memref<1x64x32xbf16, #tpu.memory_space<vmem>>, vector<1x64x32xbf16>
      %24 = vector.shape_cast %23 : vector<1x64x32xbf16> to vector<64x32xbf16>
      %cst_13 = arith.constant dense<0.000000e+00> : vector<128x32xf32>
      %25 = tpu.matmul %22, %24, %cst_13 {dimension_numbers = #tpu.dot_dimension_numbers<[1], [0], [0], [1], [0, 0, 1, 1], [], []>} : vector<128x64xbf16>, vector<64x32xbf16>, vector<128x32xf32> -> vector<128x32xf32>
      %c0_i32_14 = arith.constant 0 : i32
      %26 = arith.cmpi eq, %arg1, %c0_i32_14 : i32
      %27 = arith.extui %26 : i1 to i32
      %c0_i32_15 = arith.constant 0 : i32
      %28 = arith.cmpi ne, %27, %c0_i32_15 : i32
      scf.if %28 {
        %c0_20 = arith.constant 0 : index
        %c0_21 = arith.constant 0 : index
        %35 = vector.load %arg9[%c0_20, %c0_21] : memref<128x32xf32, #tpu.memory_space<vmem>>, vector<128x32xf32>
        tpu.vector_store %arg9[%c0_20, %c0_21], %25 {strides = array<i32>} : memref<128x32xf32, #tpu.memory_space<vmem>>, vector<128x32xf32>,
      } else {
      }
      %c0_i32_16 = arith.constant 0 : i32
      %29 = arith.cmpi sgt, %arg1, %c0_i32_16 : i32
      %30 = arith.extui %29 : i1 to i32
      %c0_i32_17 = arith.constant 0 : i32
      %31 = arith.cmpi ne, %30, %c0_i32_17 : i32
      scf.if %31 {
        %c0_20 = arith.constant 0 : index
        %c0_21 = arith.constant 0 : index
        %35 = vector.load %arg9[%c0_20, %c0_21] : memref<128x32xf32, #tpu.memory_space<vmem>>, vector<128x32xf32>
        %36 = arith.addf %35, %25 : vector<128x32xf32>
        %c0_22 = arith.constant 0 : index
        %c0_23 = arith.constant 0 : index
        %37 = vector.load %arg9[%c0_22, %c0_23] : memref<128x32xf32, #tpu.memory_space<vmem>>, vector<128x32xf32>
        tpu.vector_store %arg9[%c0_22, %c0_23], %36 {strides = array<i32>} : memref<128x32xf32, #tpu.memory_space<vmem>>, vector<128x32xf32>,
      } else {
      }
      %c0_i32_18 = arith.constant 0 : i32
      %32 = arith.cmpi eq, %arg1, %c0_i32_18 : i32
      %33 = arith.extui %32 : i1 to i32
      %c0_i32_19 = arith.constant 0 : i32
      %34 = arith.cmpi ne, %33, %c0_i32_19 : i32
      scf.if %34 {
        %c0_20 = arith.constant 0 : index
        %c0_21 = arith.constant 0 : index
        %35 = vector.load %arg9[%c0_20, %c0_21] : memref<128x32xf32, #tpu.memory_space<vmem>>, vector<128x32xf32>
        %c0_22 = arith.constant 0 : index
        %c0_23 = arith.constant 0 : index
        %36 = vector.load %arg5[%c0_22, %c0_23] : memref<128x1xf32, #tpu.memory_space<vmem>>, vector<128x1xf32>
        %37 = vector.broadcast %36 : vector<128x1xf32> to vector<128x32xf32>
        %38 = arith.mulf %35, %37 : vector<128x32xf32>
        %c0_24 = arith.constant 0 : index
        %c0_25 = arith.constant 0 : index
        %39 = vector.load %arg8[%c0_24, %c0_25] : memref<128x32xf32, #tpu.memory_space<vmem>>, vector<128x32xf32>
        tpu.vector_store %arg8[%c0_24, %c0_25], %38 {strides = array<i32>} : memref<128x32xf32, #tpu.memory_space<vmem>>, vector<128x32xf32>,
      } else {
      }
    } else {
    }
    %true = arith.constant true
    %5 = arith.xori %2, %true : i1
    %c0_i32_1 = arith.constant 0 : i32
    %6 = arith.cmpi eq, %arg1, %c0_i32_1 : i32
    %7 = arith.andi %5, %6 : i1
    %8 = arith.extui %7 : i1 to i32
    %c0_i32_2 = arith.constant 0 : i32
    %9 = arith.cmpi ne, %8, %c0_i32_2 : i32
    scf.if %9 {
      %cst = arith.constant 0.000000e+00 : f32
      %10 = vector.broadcast %cst : f32 to vector<128x32xf32>
      %c0 = arith.constant 0 : index
      %c0_3 = arith.constant 0 : index
      %11 = vector.load %arg8[%c0, %c0_3] : memref<128x32xf32, #tpu.memory_space<vmem>>, vector<128x32xf32>
      tpu.vector_store %arg8[%c0, %c0_3], %10 {strides = array<i32>} : memref<128x32xf32, #tpu.memory_space<vmem>>, vector<128x32xf32>,
    } else {
    }
    return
  }
  func.func @transform_0(%arg0: i32, %arg1: i32, %arg2: memref<4xi32, #tpu.memory_space<smem>>, %arg3: memref<4xi32, #tpu.memory_space<smem>>) -> (i32, i32) {
    %c0_i32 = arith.constant 0 : i32
    %c0_i32_0 = arith.constant 0 : i32
    return %arg0, %c0_i32 : i32, i32
  }
  func.func @transform_1(%arg0: i32, %arg1: i32, %arg2: memref<4xi32, #tpu.memory_space<smem>>, %arg3: memref<4xi32, #tpu.memory_space<smem>>) -> (i32, i32) {
    %c0_i32 = arith.constant 0 : i32
    %c0_i32_0 = arith.constant 0 : i32
    return %arg0, %c0_i32 : i32, i32
  }
  func.func @transform_2(%arg0: i32, %arg1: i32, %arg2: memref<4xi32, #tpu.memory_space<smem>>, %arg3: memref<4xi32, #tpu.memory_space<smem>>) -> (i32, i32, i32) {
    %0 = arith.index_cast %arg0 : i32 to index
    %1 = memref.load %arg2[%0] : memref<4xi32, #tpu.memory_space<smem>>
    %c0_i32 = arith.constant 0 : i32
    %c0_i32_0 = arith.constant 0 : i32
    %c0_i32_1 = arith.constant 0 : i32
    return %1, %c0_i32, %c0_i32_0 : i32, i32, i32
  }
  func.func @transform_3(%arg0: i32, %arg1: i32, %arg2: memref<4xi32, #tpu.memory_space<smem>>, %arg3: memref<4xi32, #tpu.memory_space<smem>>) -> (i32, i32, i32) {
    %0 = arith.index_cast %arg0 : i32 to index
    %1 = memref.load %arg2[%0] : memref<4xi32, #tpu.memory_space<smem>>
    %c0_i32 = arith.constant 0 : i32
    %c0_i32_0 = arith.constant 0 : i32
    %c0_i32_1 = arith.constant 0 : i32
    return %1, %c0_i32, %c0_i32_0 : i32, i32, i32
  }
  func.func @transform_4(%arg0: i32, %arg1: i32, %arg2: memref<4xi32, #tpu.memory_space<smem>>, %arg3: memref<4xi32, #tpu.memory_space<smem>>) -> (i32, i32) {
    %c0_i32 = arith.constant 0 : i32
    %c0_i32_0 = arith.constant 0 : i32
    return %arg0, %c0_i32 : i32, i32
  }
}

</mosaic_0001>

<bundles_post_ra>
// kernel: expert_choice_moe_forward.1
= control target key start
LH: loop header
LB: loop body
LE: loop exit
PB: predicated region body
PF: predicated region fallthrough
CT: control target
= control target key end

     0   :  { %s1860_s27 = smov [#allocation4]   ;;  %s1861_s28 = smov [#allocation5]   ;;  %s2831_s0 = inlined_call_operand.vmem [shape: s32[4], index: 0, kind: input, shape index: {}]   ;;  %s2832_s2 = inlined_call_operand.vmem [shape: bf16[512,32], index: 2, kind: input, shape index: {}]   ;;  %s2833_s3 = inlined_call_operand.vmem [shape: f32[512,1], index: 3, kind: input, shape index: {}]   ;;  %s2834_s4 = inlined_call_operand.vmem [shape: bf16[4,32,64], index: 4, kind: input, shape index: {}]   ;;  %s2835_s5 = inlined_call_operand.vmem [shape: bf16[4,64,32], index: 5, kind: input, shape index: {}]   ;;  %s2836_s6 = inlined_call_operand.vmem [shape: f32[512,32], index: 6, kind: output, shape index: {}]   ;;  %s2837_s1 = inlined_call_operand.vmem [shape: s32[4], index: 1, kind: input, shape index: {}]  }
   0x1   :  { %s12_s23 = sshll.u32 %s2831_s0, 4  ;;  %s17_s26 = sshll.u32 %s2837_s1, 4  ;;  %s13_s23 = int_to_ptr.vmem [resolvable:$true] %s12_s23  ;;  %s18_s26 = int_to_ptr.vmem [resolvable:$true] %s17_s26 }
   0x2   :  { %15 = dma.vmem_to_smem %s13_s23, 16, %s1860_s27, [#allocation3] }
   0x3   :  { %20 = dma.vmem_to_smem %s18_s26, 16, %s1861_s28, [#allocation3] }
   0x4   :  { %1846 = dma.done.wait [#allocation3], 32 }
   0x5   :  { %1847 = vsyncadd [#allocation3], 4294967264 }
   0x6   :  { %23 = sfence }
   0x7   :  { %s1905_s29 = smov 0   ;;  %s1907_s30 = smov 0  }
   0x8   :  { %s1909_s7 = smov 0  }
   0x9 LB: > { %s41_s0 = sadd.s32 1, %s1854_s30  ;;  %p1621_p0 = scmp.ge.s32.totalorder %s1858_s7, 1  ;;  %s1858_s7 = sphi %s1909_s7, %s29_s7   ;;  %s1854_s30 = sphi %s1907_s30, %s2877_s30   ;;  %s1850_s29 = sphi %s1905_s29, %s2876_s29  }
   0xa   : > { %p43_p1 = scmp.ge.s32.totalorder %s41_s0, 4  ;;  %p229_p2 = scmp.lt.s32.totalorder %s1858_s7, 5 }
   0xc   : > { %s2879_s0 = smov (%p43_p1, %s41_s0), 0  ;;  %p230_p3 = pnand %p1621_p0, %p229_p2 }
   0xd   : > { %s1622_s1 = sshll.u32 (!%p230_p3), %s1850_s29, 4  ;;  %s284_s8 = sld [smem:[#allocation4 + %s1850_s29]] (!%p230_p3) }
   0xe   : > { %233 = sbr.rel (%p230_p3) target bundleno = 546 (0x222), region = 36  ;;  %p273_p4 = scmp.lt.s32.totalorder (!%p230_p3), %s1622_s1, 63 }
   0xf   : > { %s291_s9 = sld [smem:[#allocation4 + %s1850_s29]] (!%p230_p3) }
  0x10   : > { %s1923_s10 = sld [smem:[#allocation5 + %s1850_s29]] (!%p230_p3) }
  0x13   : > { %s2881_s1 = smov (!%p273_p4, %s1622_s1), 63  ;;  %p285_p5 = scmp.lt.s32.totalorder %s284_s8, 3 }
  0x14   : > { %s1623_s11 = sshll.u32 %s2881_s1, 2  ;;  %s1625_s12 = sshll.u32 %s2881_s1, 3 }
  0x15   : > { %s1928_s15 = scalar_lea.vmem %s2832_s2, %s1623_s11  ;;  %s1933_s18 = scalar_lea.vmem %s2833_s3, %s1625_s12 }
  0x16   : > { %p292_p6 = scmp.lt.s32.totalorder %s291_s9, 3  ;;  %s1938_s21 = scalar_lea.vmem %s2836_s6, %s1625_s12 }
  0x17   : > { %s2883_s8 = smov (!%p285_p5, %s284_s8), 3  ;;  %p1632_p7 = scmp.eq.s32.totalorder %s1923_s10, 0 }
  0x18   : > { %s2885_s9 = smov (!%p292_p6, %s291_s9), 3  ;;  %s1724_s22 = sshll.u32 %s2883_s8, 4 }
  0x19   : > { %s289_s25 = scalar_lea.vmem %s2834_s4, %s1724_s22  ;;  %s1725_s26 = sshll.u32 %s2885_s9, 5 }
  0x1a   : > { %s1946_s29 = scalar_lea.vmem %s2835_s5, %s1725_s26  ;;  %309 = sbr.rel (%p1632_p7) target bundleno = 529 (0x211), region = 40 }
  0x1f   : > { %v1735_v0 = vld [vmem:[%s289_s25 + $0x8] sm:$0xff]  ;;  %v1734_v1 = vld [vmem:[%s289_s25] sm:$0xff]  ;;  %vm382_vm0 = vcmask 261120   ;;  %v1732_v5 = vld [vmem:[%s1928_s15 + $0x30] sm:$0xff] }
  0x20   : > { %413 = vmatpush.bf16.msra.mxu0 %v1735_v0  ;;  %1741 = vmatpush.bf16.msra.mxu3 %v1735_v0  ;;  %v1726_v2 = vld [vmem:[%s1928_s15] sm:$0xff]  ;;  %v1731_v3 = vld [vmem:[%s1928_s15 + $0x28] sm:$0xff]  ;;  %v1728_v6 = vld [vmem:[%s1928_s15 + $0x10] sm:$0xff] }
  0x21   : > { %v1727_v4 = vld [vmem:[%s1928_s15 + $0x8] sm:$0xff]  ;;  %v1733_v7 = vld [vmem:[%s1928_s15 + $0x38] sm:$0xff]  ;;  %v1730_v9 = vld [vmem:[%s1928_s15 + $0x20] sm:$0xff] }
  0x22   : > { %v1729_v8 = vld [vmem:[%s1928_s15 + $0x18] sm:$0xff] }
  0x23   : > { %v1739_v29 = vld [vmem:[%s1946_s29 + $0x18] sm:$0xff] }
  0x24   : > { %414 = vmatpush.bf16.msra.mxu0 %v1734_v1  ;;  %1742 = vmatpush.bf16.msra.mxu3 %v1734_v1 }
  0x25   : > { %1229 = vmatpush.bf16.msra.mxu1 %v1739_v29  ;;  %1743 = vmatpush.bf16.msra.mxu2 %v1739_v29 }
  0x27   : > { %1673 = vmatmul.msk.bf16.vlgmr.msra.gmra.mxu0 %vm382_vm0, %v1726_v2  ;;  %1678 = vmatmul.msk.bf16.vlgmr.msra.gmra.mxu3 %vm382_vm0, %v1731_v3 }
  0x37   : > { %1674 = vmatmul.msk.bf16.gmra.mxu0 %vm382_vm0, %v1727_v4  ;;  %1679 = vmatmul.msk.bf16.gmra.mxu3 %vm382_vm0, %v1732_v5 }
  0x47   : > { %1675 = vmatmul.msk.bf16.gmra.mxu0 %vm382_vm0, %v1728_v6  ;;  %1680 = vmatmul.msk.bf16.gmra.mxu3 %vm382_vm0, %v1733_v7 }
  0x57   : > { %1676 = vmatmul.msk.bf16.gmra.mxu0 %vm382_vm0, %v1729_v8 }
  0x67   : > { %1677 = vmatmul.msk.bf16.gmra.mxu0 %vm382_vm0, %v1730_v9 }
  0xa4   : > { %v1967_v10 = vpop.f32.mrf.mxu0 }
  0xa5   : > { %v1970_v11 = vmul.f32 0.70710677, %v1967_v10 }
  0xa7   : > { %v488_v13 = vmul.f32 %v1970_v11, %v1970_v11 }
  0xa9   : > { %v1979_v15 = vmin.f32 %v488_v13, 16.0 }
  0xaa   : > { %v2017_v49 = vpop.f32.mrf.mxu3 }
  0xab   : > { %v501_v17 = vmul.f32 3.8918573e-05, %v1979_v15  ;;  %v490_v38 = vmul.f32 2.1237322e-06, %v1979_v15  ;;  %v2024_v52 = vmul.f32 0.70710677, %v2017_v49 }
  0xac   : > { %v1972_v12 = vpop.f32.mrf.mxu0 }
  0xad   : > { %v1977_v14 = vmul.f32 0.70710677, %v1972_v12  ;;  %v502_v20 = vadd.f32 0.001143296, %v501_v17  ;;  %v491_v44 = vadd.f32 0.00028619796, %v490_v38  ;;  %v888_v61 = vmul.f32 %v2024_v52, %v2024_v52 }
  0xaf   : > { %v528_v16 = vmul.f32 %v1977_v14, %v1977_v14  ;;  %v503_v22 = vmul.f32 %v502_v20, %v1979_v15  ;;  %v492_v51 = vmul.f32 %v491_v44, %v1979_v15  ;;  %v2046_v7 = vmin.f32 %v888_v61, 16.0 }
  0xb1   : > { %v1986_v19 = vmin.f32 %v528_v16, 16.0  ;;  %v504_v25 = vadd.f32 0.014752088, %v503_v22  ;;  %v493_v60 = vadd.f32 0.0036580483, %v492_v51  ;;  %v1738_v22 = vld [vmem:[%s1946_s29 + $0x10] sm:$0xff] }
  0xb2   : > { %1230 = vmatpush.bf16.msra.mxu1 %v1738_v22  ;;  %1744 = vmatpush.bf16.msra.mxu2 %v1738_v22 }
  0xb3   : > { %v541_v21 = vmul.f32 3.8918573e-05, %v1986_v19  ;;  %v505_v30 = vmul.f32 %v504_v25, %v1979_v15  ;;  %v530_v53 = vmul.f32 2.1237322e-06, %v1986_v19  ;;  %v494_v6 = vmul.f32 %v493_v60, %v1979_v15  ;;  %v1736_v60 = vld [vmem:[%s1946_s29] sm:$0xff] }
  0xb4   : > { %v1984_v18 = vpop.f32.mrf.mxu0  ;;  %v901_v25 = vmul.f32 3.8918573e-05, %v2046_v7 }
  0xb5   : > { %v542_v23 = vadd.f32 0.001143296, %v541_v21  ;;  %v1993_v26 = vmul.f32 0.70710677, %v1984_v18  ;;  %v506_v34 = vadd.f32 0.112945676, %v505_v30 }
  0xb6   : > { %v531_v62 = vadd.f32 0.00028619796, %v530_v53 }
  0xb7   : > { %v543_v27 = vmul.f32 %v542_v23, %v1986_v19  ;;  %v568_v31 = vmul.f32 %v1993_v26, %v1993_v26  ;;  %v507_v40 = vmul.f32 %v506_v34, %v1979_v15  ;;  %v495_v23 = vadd.f32 0.05243302, %v494_v6  ;;  %v1737_v34 = vld [vmem:[%s1946_s29 + $0x8] sm:$0xff] }
  0xb8   : > { %v532_v8 = vmul.f32 %v531_v62, %v1986_v19  ;;  %1231 = vmatpush.bf16.msra.mxu1 %v1737_v34  ;;  %1745 = vmatpush.bf16.msra.mxu2 %v1737_v34 }
  0xb9   : > { %v544_v32 = vadd.f32 0.014752088, %v543_v27  ;;  %v2005_v35 = vmin.f32 %v568_v31, 16.0  ;;  %v508_v45 = vadd.f32 0.4994258, %v507_v40  ;;  %v496_v38 = vmul.f32 %v495_v23, %v1979_v15 }
  0xba   : > { %v533_v27 = vadd.f32 0.0036580483, %v532_v8  ;;  %v902_v40 = vadd.f32 0.001143296, %v901_v25 }
  0xbb   : > { %v545_v36 = vmul.f32 %v544_v32, %v1986_v19  ;;  %v581_v41 = vmul.f32 3.8918573e-05, %v2005_v35  ;;  %v509_v54 = vmul.f32 %v508_v45, %v1979_v15  ;;  %v570_v63 = vmul.f32 2.1237322e-06, %v2005_v35 }
  0xbc   : > { %v1990_v24 = vpop.f32.mrf.mxu0  ;;  %v903_v51 = vmul.f32 %v902_v40, %v2046_v7  ;;  %1232 = vmatpush.bf16.msra.mxu1 %v1736_v60  ;;  %1746 = vmatpush.bf16.msra.mxu2 %v1736_v60 }
  0xbd   : > { %v1997_v28 = vmul.f32 0.70710677, %v1990_v24  ;;  %v546_v42 = vadd.f32 0.112945676, %v545_v36  ;;  %v582_v46 = vadd.f32 0.001143296, %v581_v41  ;;  %v534_v41 = vmul.f32 %v533_v27, %v1986_v19 }
  0xbe   : > { %v2040_v1 = vadd.f32 1.0, %v509_v54  ;;  %v571_v9 = vadd.f32 0.00028619796, %v570_v63  ;;  %v904_v6 = vadd.f32 0.014752088, %v903_v51  ;;  %v2119_v51 = vmul.f32 0.5, %v1990_v24 }
  0xbf   : > { %v608_v33 = vmul.f32 %v1997_v28, %v1997_v28  ;;  %v547_v47 = vmul.f32 %v546_v42, %v1986_v19  ;;  %v583_v55 = vmul.f32 %v582_v46, %v2005_v35  ;;  %v535_v54 = vadd.f32 0.05243302, %v534_v41 }
  0xc0   : > { %1778 = vrcp.f32 %v2040_v1  ;;  %v572_v29 = vmul.f32 %v571_v9, %v2005_v35  ;;  %v2087_v9 = vmul.f32 0.5, %v1967_v10  ;;  %v522_v41 = vand.u32 2147483648, %v2040_v1 }
  0xc1   : > { %v2008_v37 = vmin.f32 %v608_v33, 16.0  ;;  %v548_v57 = vadd.f32 0.4994258, %v547_v47  ;;  %v584_v2 = vadd.f32 0.014752088, %v583_v55  ;;  %vm516_vm2 = vweird.f32 %v2040_v1 }
  0xc2   : > { %v573_v42 = vadd.f32 0.0036580483, %v572_v29 }
  0xc3   : > { %v621_v43 = vmul.f32 3.8918573e-05, %v2008_v37  ;;  %v549_v3 = vmul.f32 %v548_v57, %v1986_v19  ;;  %v585_v16 = vmul.f32 %v584_v2, %v2005_v35 }
  0xc4   : > { %v2011_v39 = vpop.f32.mrf.mxu0  ;;  %v574_v55 = vmul.f32 %v573_v42, %v2005_v35 }
  0xc5   : > { %v622_v48 = vadd.f32 0.001143296, %v621_v43  ;;  %v2020_v50 = vmul.f32 0.70710677, %v2011_v39  ;;  %v2053_v17 = vadd.f32 1.0, %v549_v3 }
  0xc6   : > { %v586_v31 = vadd.f32 0.112945676, %v585_v16  ;;  %v2064_v36 = vpop.eup %1778  ;;  %v575_v16 = vadd.f32 0.05243302, %v574_v55 }
  0xc7   : > { %v623_v58 = vmul.f32 %v622_v48, %v2008_v37  ;;  %v648_v59 = vmul.f32 %v2020_v50, %v2020_v50  ;;  %1780 = vrcp.f32 %v2053_v17  ;;  %v512_v45 = vmul.f32 %v2064_v36, %v2040_v1 }
  0xc8   : > { %v587_v44 = vmul.f32 %v586_v31, %v2005_v35  ;;  %v497_v48 = vadd.f32 0.18741608, %v496_v38  ;;  %v576_v34 = vmul.f32 %v575_v16, %v2005_v35  ;;  %vm517_vm1 = vweird.f32 %v2064_v36 }
  0xc9   : > { %v624_v4 = vadd.f32 0.014752088, %v623_v58  ;;  %v2043_v5 = vmin.f32 %v648_v59, 16.0  ;;  %v610_v59 = vmul.f32 2.1237322e-06, %v2008_v37  ;;  %v513_v61 = vsub.f32 1.0, %v512_v45  ;;  %vm2130_vm4 = vmor %vm516_vm2, %vm517_vm1 }
  0xca   : > { %v588_v58 = vadd.f32 0.4994258, %v587_v44  ;;  %v498_v2 = vmul.f32 %v497_v48, %v1979_v15  ;;  %v536_v15 = vmul.f32 %v535_v54, %v1986_v19  ;;  %v562_v16 = vand.u32 2147483648, %v2053_v17 }
  0xcb   : > { %v625_v20 = vmul.f32 %v624_v4, %v2008_v37  ;;  %v661_v21 = vmul.f32 3.8918573e-05, %v2043_v5  ;;  %v890_v4 = vmul.f32 2.1237322e-06, %v2046_v7  ;;  %v611_v23 = vadd.f32 0.00028619796, %v610_v59 }
  0xcc   : > { %v2029_v56 = vpop.f32.mrf.mxu0  ;;  %v589_v22 = vmul.f32 %v588_v58, %v2005_v35  ;;  %v514_v25 = vmul.f32 %v2064_v36, %v513_v61  ;;  %v499_v29 = vadd.f32 1.1283791, %v498_v2  ;;  %v537_v42 = vadd.f32 0.18741608, %v536_v15 }
  0xcd   : > { %v2038_v0 = vmul.f32 0.70710677, %v2029_v56  ;;  %v626_v32 = vadd.f32 0.112945676, %v625_v20  ;;  %v662_v33 = vadd.f32 0.001143296, %v661_v21  ;;  %v2075_v53 = vpop.eup %1780  ;;  %v612_v44 = vmul.f32 %v611_v23, %v2008_v37 }
  0xce   : > { %v552_v3 = vmul.f32 %v2075_v53, %v2053_v17  ;;  %v2095_v21 = vmul.f32 0.5, %v1984_v18  ;;  %v520_v18 = vand.u32 2147483647, %v2040_v1  ;;  %v515_v45 = vadd.f32 %v2064_v36, %v514_v25 }
  0xcf   : > { %v688_v13 = vmul.f32 %v2038_v0, %v2038_v0  ;;  %v627_v46 = vmul.f32 %v626_v32, %v2008_v37  ;;  %v663_v47 = vmul.f32 %v662_v33, %v2043_v5  ;;  %v891_v32 = vadd.f32 0.00028619796, %v890_v4 }
  0xd0   : > { %v553_v31 = vsub.f32 1.0, %v552_v3  ;;  %v905_v33 = vmul.f32 %v904_v6, %v2046_v7  ;;  %vm2125_vm3 = vcmp.eq.f32.partialorder %v520_v18, 8.507059e+37  ;;  %v577_v58 = vadd.f32 0.18741608, %v576_v34  ;;  %v2144_v6 = vpop.f32.mrf.mxu3 }
  0xd1   : > { %v2060_v30 = vmin.f32 %v688_v13, 16.0  ;;  %v628_v62 = vadd.f32 0.4994258, %v627_v46  ;;  %v664_v63 = vadd.f32 0.014752088, %v663_v47  ;;  %v2090_v13 = vmul.f32 0.5, %v1972_v12 }
  0xd2   : > { %v554_v48 = vmul.f32 %v2075_v53, %v553_v31  ;;  %v892_v54 = vmul.f32 %v891_v32, %v2046_v7  ;;  %v523_v61 = vor.u32 1.1754944e-38, %v522_v41  ;;  %v538_v24 = vmul.f32 %v537_v42, %v1986_v19 }
  0xd3   : > { %v701_v43 = vmul.f32 3.8918573e-05, %v2060_v30  ;;  %v629_v27 = vmul.f32 %v628_v62, %v2008_v37  ;;  %v665_v10 = vmul.f32 %v664_v63, %v2043_v5  ;;  %v613_v62 = vadd.f32 0.0036580483, %v612_v44 }
  0xd4   : > { %v2084_v8 = vpop.f32.mrf.mxu0  ;;  %v519_v1 = vsel %vm2130_vm4, %v2064_v36, %v515_v45  ;;  %v650_v63 = vmul.f32 2.1237322e-06, %v2043_v5  ;;  %v555_v3 = vadd.f32 %v2075_v53, %v554_v48  ;;  %vm557_vm5 = vweird.f32 %v2075_v53 }
  0xd5   : > { %v702_v57 = vadd.f32 0.001143296, %v701_v43  ;;  %v2102_v12 = vmul.f32 0.70710677, %v2084_v8  ;;  %v2110_v43 = vadd.f32 1.0, %v589_v22  ;;  %v2115_v46 = vadd.f32 1.0, %v629_v27 }
  0xd6   : > { %v666_v47 = vadd.f32 0.112945676, %v665_v10  ;;  %v893_v4 = vadd.f32 0.0036580483, %v892_v54  ;;  %v906_v36 = vadd.f32 0.112945676, %v905_v33  ;;  %v524_v22 = vsel %vm2125_vm3, %v523_v61, %v519_v1 }
  0xd7   : > { %v703_v20 = vmul.f32 %v702_v57, %v2060_v30  ;;  %v728_v40 = vmul.f32 %v2102_v12, %v2102_v12  ;;  %1782 = vrcp.f32 %v2110_v43  ;;  %vm556_vm6 = vweird.f32 %v2053_v17 }
  0xd8   : > { %1784 = vrcp.f32 %v2115_v46  ;;  %v667_v2 = vmul.f32 %v666_v47, %v2043_v5  ;;  %v560_v23 = vand.u32 2147483647, %v2053_v17  ;;  %v614_v25 = vmul.f32 %v613_v62, %v2008_v37  ;;  %vm2155_vm7 = vmor %vm556_vm6, %vm557_vm5 }
  0xd9   : > { %v704_v38 = vadd.f32 0.014752088, %v703_v20  ;;  %v2122_v55 = vmin.f32 %v728_v40, 16.0  ;;  %v578_v20 = vmul.f32 %v577_v58, %v2005_v35  ;;  %v500_v27 = vmul.f32 %v499_v29, %v1970_v11 }
  0xda   : > { %v651_v31 = vadd.f32 0.00028619796, %v650_v63  ;;  %v668_v32 = vadd.f32 0.4994258, %v667_v2  ;;  %v2160_v35 = vmul.f32 0.70710677, %v2144_v6  ;;  %v559_v17 = vsel %vm2155_vm7, %v2075_v53, %v555_v3 }
  0xdb   : > { %v705_v59 = vmul.f32 %v704_v38, %v2060_v30  ;;  %v741_v19 = vmul.f32 3.8918573e-05, %v2122_v55  ;;  %v539_v18 = vadd.f32 1.1283791, %v538_v24  ;;  %v894_v34 = vmul.f32 %v893_v4, %v2046_v7 }
  0xdc   : > { %v525_v29 = vmul.f32 %v524_v22, %v500_v27  ;;  %v563_v40 = vor.u32 1.1754944e-38, %v562_v16  ;;  %v579_v41 = vadd.f32 1.1283791, %v578_v20  ;;  %vm561_vm8 = vcmp.eq.f32.partialorder %v560_v23, 8.507059e+37  ;;  %v2187_v2 = vpop.f32.mrf.mxu0 }
  0xdd   : > { %v706_v15 = vadd.f32 0.112945676, %v705_v59  ;;  %v2162_v33 = vpop.eup %1782  ;;  %v742_v38 = vadd.f32 0.001143296, %v741_v19  ;;  %v615_v44 = vadd.f32 0.05243302, %v614_v25  ;;  %v907_v45 = vmul.f32 %v906_v36, %v2046_v7 }
  0xde   : > { %v2168_v11 = vpop.eup %1784  ;;  %v564_v48 = vsel %vm561_vm8, %v563_v40, %v559_v17  ;;  %v592_v53 = vmul.f32 %v2162_v33, %v2110_v43  ;;  %v652_v54 = vmul.f32 %v651_v31, %v2043_v5  ;;  %v669_v57 = vmul.f32 %v668_v32, %v2043_v5 }
  0xdf   : > { %v707_v42 = vmul.f32 %v706_v15, %v2060_v30  ;;  %v743_v47 = vmul.f32 %v742_v38, %v2122_v55  ;;  %v540_v58 = vmul.f32 %v539_v18, %v1977_v14  ;;  %v632_v59 = vmul.f32 %v2168_v11, %v2115_v46 }
  0xe0   : > { %v895_v60 = vadd.f32 0.05243302, %v894_v34  ;;  %v690_v61 = vmul.f32 2.1237322e-06, %v2060_v30  ;;  %v1681_v24 = vclamps-f32 %v525_v29, 1.0  ;;  %v2182_v62 = vmul.f32 %v579_v41, %v1993_v26 }
  0xe1   : > { %v2185_v1 = vmul.f32 0.5, %v2011_v39  ;;  %v708_v63 = vadd.f32 0.4994258, %v707_v42  ;;  %v565_v3 = vmul.f32 %v564_v48, %v540_v58  ;;  %v616_v4 = vmul.f32 %v615_v44, %v2008_v37 }
  0xe2   : > { %v928_v14 = vmul.f32 %v2160_v35, %v2160_v35  ;;  %v744_v19 = vadd.f32 0.014752088, %v743_v47  ;;  %v593_v16 = vsub.f32 1.0, %v592_v53  ;;  %v908_v20 = vadd.f32 0.4994258, %v907_v45 }
  0xe3   : > { %v653_v36 = vadd.f32 0.0036580483, %v652_v54  ;;  %v2192_v15 = vadd.f32 1.0, %v669_v57  ;;  %v633_v26 = vsub.f32 1.0, %v632_v59  ;;  %v2195_v22 = vmul.f32 %v895_v60, %v2046_v7 }
  0xe4   : > { %v691_v39 = vadd.f32 0.00028619796, %v690_v61  ;;  %v2198_v23 = vmul.f32 0.70710677, %v2187_v2  ;;  %v1128_v25 = vadd.f32 1.0, %v1681_v24  ;;  %v709_v10 = vmul.f32 %v708_v63, %v2060_v30 }
  0xe5   : > { %v600_v27 = vand.u32 2147483647, %v2110_v43  ;;  %v745_v31 = vmul.f32 %v744_v19, %v2122_v55  ;;  %v1682_v32 = vclamps-f32 %v565_v3, 1.0  ;;  %v617_v18 = vadd.f32 0.18741608, %v616_v4 }
  0xe6   : > { %v2203_v17 = vmin.f32 %v928_v14, 16.0  ;;  %v768_v34 = vmul.f32 %v2198_v23, %v2198_v23  ;;  %v594_v38 = vmul.f32 %v2162_v33, %v593_v16  ;;  %v2209_v29 = vmul.f32 %v908_v20, %v2046_v7 }
  0xe7   : > { %v654_v40 = vmul.f32 %v653_v36, %v2043_v5  ;;  %1786 = vrcp.f32 %v2192_v15  ;;  %vm596_vm9 = vweird.f32 %v2110_v43  ;;  %v602_v41 = vand.u32 2147483648, %v2110_v43 }
  0xe8   : > { %v634_v42 = vmul.f32 %v2168_v11, %v633_v26  ;;  %v692_v44 = vmul.f32 %v691_v39, %v2060_v30  ;;  %v1144_v45 = vmul.f32 %v1128_v25, %v2087_v9  ;;  %vm2218_vm10 = vcmp.eq.f32.partialorder %v600_v27, 8.507059e+37 }
  0xe9   : > { %v2222_v48 = vadd.f32 1.0, %v709_v10  ;;  %v746_v53 = vadd.f32 0.112945676, %v745_v31  ;;  %v1129_v54 = vadd.f32 1.0, %v1682_v32  ;;  %v618_v57 = vmul.f32 %v617_v18, %v2008_v37 }
  0xea   : > { %v941_v58 = vmul.f32 3.8918573e-05, %v2203_v17  ;;  %v2226_v59 = vmin.f32 %v768_v34, 16.0  ;;  %v595_v60 = vadd.f32 %v2162_v33, %v594_v38  ;;  %vm597_vm11 = vweird.f32 %v2162_v33 }
  0xeb   : > { %vm637_vm12 = vweird.f32 %v2168_v11  ;;  %v655_v9 = vadd.f32 0.05243302, %v654_v40  ;;  %v635_v61 = vadd.f32 %v2168_v11, %v634_v42  ;;  %v693_v24 = vadd.f32 0.0036580483, %v692_v44  ;;  %vm2243_vm13 = vmor %vm596_vm9, %vm597_vm11 }
  0xec   : > { %v730_v63 = vmul.f32 2.1237322e-06, %v2122_v55  ;;  %v781_v3 = vmul.f32 3.8918573e-05, %v2226_v59  ;;  %v640_v37 = vand.u32 2147483647, %v2115_v46  ;;  %1788 = vrcp.f32 %v2222_v48 }
  0xed   : > { %v2234_v4 = vpop.eup %1786  ;;  %v642_v14 = vand.u32 2147483648, %v2115_v46  ;;  %v747_v19 = vmul.f32 %v746_v53, %v2122_v55  ;;  %v1145_v16 = vmul.f32 %v1129_v54, %v2090_v13  ;;  %vm636_vm14 = vweird.f32 %v2115_v46 }
  0xee   : > { %v942_v36 = vadd.f32 0.001143296, %v941_v58  ;;  %v782_v26 = vadd.f32 0.001143296, %v781_v3  ;;  %v599_v39 = vsel %vm2243_vm13, %v2162_v33, %v595_v60  ;;  %v603_v25 = vor.u32 1.1754944e-38, %v602_v41  ;;  %vm2253_vm15 = vmor %vm636_vm14, %vm637_vm12  ;;  %v2268_v41 = vpop.f32.mrf.mxu3 }
  0xef   : > { %v619_v27 = vadd.f32 1.1283791, %v618_v57  ;;  %v656_v43 = vmul.f32 %v655_v9, %v2043_v5  ;;  %v639_v46 = vsel %vm2253_vm15, %v2168_v11, %v635_v61  ;;  %v672_v10 = vmul.f32 %v2234_v4, %v2192_v15 }
  0xf0   : > { %v694_v31 = vmul.f32 %v693_v24, %v2060_v30  ;;  %v731_v33 = vadd.f32 0.00028619796, %v730_v63  ;;  %vm641_vm1 = vcmp.eq.f32.partialorder %v640_v37, 8.507059e+37  ;;  %v643_v32 = vor.u32 1.1754944e-38, %v642_v14 }
  0xf1   : > { %v748_v18 = vadd.f32 0.4994258, %v747_v19  ;;  %v770_v34 = vmul.f32 2.1237322e-06, %v2226_v59  ;;  %v604_v38 = vsel %vm2218_vm10, %v603_v25, %v599_v39  ;;  %v943_v40 = vmul.f32 %v942_v36, %v2203_v17  ;;  %v2284_v19 = vpop.f32.mrf.mxu0 }
  0xf2   : > { %v783_v11 = vmul.f32 %v782_v26, %v2226_v59  ;;  %v1160_v42 = vpack.c.bf16 %v1145_v16, %v1144_v45  ;;  %v2271_v44 = vpop.eup %1788  ;;  %v620_v53 = vmul.f32 %v619_v27, %v1997_v28  ;;  %v644_v54 = vsel %vm641_vm1, %v643_v32, %v639_v46 }
  0xf3   : > { %v657_v57 = vadd.f32 0.18741608, %v656_v43  ;;  %v2275_v58 = vmul.f32 0.70710677, %v2268_v41  ;;  %v673_v60 = vsub.f32 1.0, %v672_v10  ;;  %v732_v47 = vmul.f32 %v731_v33, %v2122_v55 }
  0xf4   : > { %v695_v9 = vadd.f32 0.05243302, %v694_v31  ;;  %v784_v61 = vadd.f32 0.014752088, %v783_v11  ;;  %v605_v24 = vmul.f32 %v604_v38, %v2182_v62  ;;  %v749_v63 = vmul.f32 %v748_v18, %v2122_v55 }
  0xf5   : > { %v771_v3 = vadd.f32 0.00028619796, %v770_v34  ;;  %vm1200_vm2 = vcmask 523264   ;;  %v645_v45 = vmul.f32 %v644_v54, %v620_v53  ;;  %v944_v37 = vadd.f32 0.014752088, %v943_v40 }
  0xf6   : > { %v712_v28 = vmul.f32 %v2271_v44, %v2222_v48  ;;  %v785_v14 = vmul.f32 %v784_v61, %v2226_v59  ;;  %1713 = vmatmul.msk.bf16.vlgmr.msra.gmra.mxu1 %vm1200_vm2, %v1160_v42  ;;  %v2287_v16 = vadd.f32 0.18741608, %v2195_v22  ;;  %v2290_v62 = vadd.f32 1.0, %v2209_v29  ;;  %v2312_v42 = vpop.f32.mrf.mxu3 }
  0xf7   : > { %v658_v20 = vmul.f32 %v657_v57, %v2043_v5  ;;  %v968_v36 = vmul.f32 %v2275_v58, %v2275_v58  ;;  %v674_v26 = vmul.f32 %v2234_v4, %v673_v60  ;;  %v696_v39 = vmul.f32 %v695_v9, %v2060_v30 }
  0xf8   : > { %v733_v25 = vadd.f32 0.0036580483, %v732_v47  ;;  %v786_v27 = vadd.f32 0.112945676, %v785_v14  ;;  %v930_v13 = vmul.f32 2.1237322e-06, %v2203_v17  ;;  %v772_v22 = vmul.f32 %v771_v3, %v2226_v59 }
  0xf9   : > { %v2298_v43 = vadd.f32 1.0, %v749_v63  ;;  %v2302_v29 = vmul.f32 0.70710677, %v2284_v19  ;;  %v1683_v46 = vclamps-f32 %v605_v24, 1.0  ;;  %v1684_v5 = vclamps-f32 %v645_v45, 1.0 }
  0xfa   : > { %v945_v10 = vmul.f32 %v944_v37, %v2203_v17  ;;  %v713_v31 = vsub.f32 1.0, %v712_v28  ;;  %v659_v33 = vadd.f32 1.1283791, %v658_v20  ;;  %v682_v32 = vand.u32 2147483648, %v2192_v15 }
  0xfb   : > { %v2306_v18 = vmin.f32 %v968_v36, 16.0  ;;  %v787_v34 = vmul.f32 %v786_v27, %v2226_v59  ;;  %v675_v38 = vadd.f32 %v2234_v4, %v674_v26  ;;  %vm677_vm3 = vweird.f32 %v2234_v4 }
  0xfc   : > { %v697_v40 = vadd.f32 0.18741608, %v696_v39  ;;  %v734_v11 = vmul.f32 %v733_v25, %v2122_v55  ;;  %1790 = vrcp.f32 %v2298_v43  ;;  %v773_v53 = vadd.f32 0.0036580483, %v772_v22 }
  0xfd   : > { %v788_v54 = vadd.f32 0.4994258, %v787_v34  ;;  %v808_v57 = vmul.f32 %v2302_v29, %v2302_v29  ;;  %v1130_v60 = vadd.f32 1.0, %v1683_v46  ;;  %vm676_vm4 = vweird.f32 %v2192_v15 }
  0xfe   : > { %v680_v9 = vand.u32 2147483647, %v2192_v15  ;;  %v714_v47 = vmul.f32 %v2271_v44, %v713_v31  ;;  %vm2320_vm5 = vmor %vm676_vm4, %vm677_vm3  ;;  %v946_v24 = vadd.f32 0.112945676, %v945_v10  ;;  %v2325_v63 = vmul.f32 0.70710677, %v2312_v42  ;;  %v2365_v61 = vpop.f32.mrf.mxu3 }
  0xff   : > { %v789_v3 = vmul.f32 %v788_v54, %v2226_v59  ;;  %v2328_v45 = vmin.f32 %v808_v57, 16.0  ;;  %v1131_v37 = vadd.f32 1.0, %v1684_v5  ;;  %v679_v28 = vsel %vm2320_vm5, %v2234_v4, %v675_v38 }
 0x100   : > { %v981_v15 = vmul.f32 3.8918573e-05, %v2306_v18  ;;  %v735_v14 = vadd.f32 0.05243302, %v734_v11  ;;  %v660_v20 = vmul.f32 %v659_v33, %v2020_v50  ;;  %v683_v36 = vor.u32 1.1754944e-38, %v682_v32 }
 0x101   : > { %v698_v26 = vmul.f32 %v697_v40, %v2060_v30  ;;  %v774_v39 = vmul.f32 %v773_v53, %v2226_v59  ;;  %vm681_vm6 = vcmp.eq.f32.partialorder %v680_v9, 8.507059e+37  ;;  %v715_v25 = vadd.f32 %v2271_v44, %v714_v47 }
 0x102   : > { %vm717_vm7 = vweird.f32 %v2271_v44  ;;  %v2339_v27 = vadd.f32 1.0, %v789_v3  ;;  %v2341_v22 = vpop.eup %1790  ;;  %v684_v4 = vsel %vm681_vm6, %v683_v36, %v679_v28  ;;  %v722_v46 = vand.u32 2147483648, %v2222_v48 }
 0x103   : > { %v1008_v50 = vmul.f32 %v2325_v63, %v2325_v63  ;;  %v821_v5 = vmul.f32 3.8918573e-05, %v2328_v45  ;;  %vm716_vm8 = vweird.f32 %v2222_v48  ;;  %v720_v30 = vand.u32 2147483647, %v2222_v48 }
 0x104   : > { %v736_v10 = vmul.f32 %v735_v14, %v2122_v55  ;;  %1792 = vrcp.f32 %v2339_v27  ;;  %v1147_v31 = vmul.f32 %v1131_v37, %v2119_v51  ;;  %v931_v33 = vadd.f32 0.00028619796, %v930_v13  ;;  %vm2352_vm9 = vmor %vm716_vm8, %vm717_vm7  ;;  %v1365_v37 = vld [vmem:[%s1933_s18] sm:$0xff]  ;;  %v2370_v14 = vpop.f32.mrf.mxu0 }
 0x105   : > { %v699_v32 = vadd.f32 1.1283791, %v698_v26  ;;  %v775_v38 = vadd.f32 0.05243302, %v774_v39  ;;  %v685_v40 = vmul.f32 %v684_v4, %v660_v20  ;;  %v719_v11 = vsel %vm2352_vm9, %v2271_v44, %v715_v25 }
 0x106   : > { %v752_v48 = vmul.f32 %v2341_v22, %v2298_v43  ;;  %v822_v53 = vadd.f32 0.001143296, %v821_v5  ;;  %v1146_v54 = vmul.f32 %v1130_v60, %v2095_v21  ;;  %v947_v51 = vmul.f32 %v946_v24, %v2203_v17 }
 0x107   : > { %v723_v13 = vor.u32 1.1754944e-38, %v722_v46  ;;  %v2363_v57 = vmin.f32 %v1008_v50, 16.0  ;;  %vm721_vm10 = vcmp.eq.f32.partialorder %v720_v30, 8.507059e+37  ;;  %v982_v9 = vadd.f32 0.001143296, %v981_v15 }
 0x108   : > { %v737_v47 = vadd.f32 0.18741608, %v736_v10  ;;  %v823_v3 = vmul.f32 %v822_v53, %v2328_v45  ;;  %v776_v28 = vmul.f32 %v775_v38, %v2226_v59  ;;  %v1161_v20 = vpack.c.bf16 %v1147_v31, %v1146_v54 }
 0x109   : > { %v724_v44 = vsel %vm721_vm10, %v723_v13, %v719_v11  ;;  %v1685_v60 = vclamps-f32 %v685_v40, 1.0  ;;  %v700_v24 = vmul.f32 %v699_v32, %v2038_v0  ;;  %v753_v36 = vsub.f32 1.0, %v752_v48  ;;  %v1366_v13 = vld [vmem:[%s1933_s18 + $0x8] sm:$0xff] }
 0x10a   : > { %v2372_v21 = vpop.eup %1792  ;;  %v824_v15 = vadd.f32 0.014752088, %v823_v3  ;;  %v1862_v26 = vmov 0   ;;  %v2377_v39 = vmul.f32 %v2287_v16, %v2046_v7  ;;  %1794 = vrcp.f32 %v2290_v62  ;;  %1714 = vmatmul.msk.bf16.gmra.mxu1 %vm1200_vm2, %v1161_v20  ;;  %v1367_v7 = vld [vmem:[%s1933_s18 + $0x10] sm:$0xff] }
 0x10b   : > { %1775 = vset.pattern.permute.xlu0 %v1862_v26  ;;  %1776 = vset.pattern.permute.xlu1 %v1862_v26  ;;  %v1021_v25 = vmul.f32 3.8918573e-05, %v2363_v57  ;;  %v792_v4 = vmul.f32 %v2372_v21, %v2339_v27  ;;  %v461_v0 = vmul.f32 0.5, %v2029_v56  ;;  %v725_v46 = vmul.f32 %v724_v44, %v700_v24 }
 0x10c   : > { %1383 = vperm.xlu0 %1775, %v1365_v37   ;;  %v738_v50 = vmul.f32 %v737_v47, %v2122_v55  ;;  %v2387_v5 = vmul.f32 0.70710677, %v2370_v14  ;;  %1777 = vset.pattern.permute.xlu2 %v1862_v26  ;;  %v932_v16 = vmul.f32 %v931_v33, %v2203_v17  ;;  %v777_v30 = vadd.f32 0.18741608, %v776_v28 }
 0x10d   : > { %v793_v10 = vsub.f32 1.0, %v792_v4  ;;  %v825_v31 = vmul.f32 %v824_v15, %v2328_v45  ;;  %1393 = vperm.xlu1 %1776, %v1367_v7   ;;  %v1132_v32 = vadd.f32 1.0, %v1685_v60  ;;  %v2392_v34 = vadd.f32 0.4994258, %v947_v51  ;;  %v2416_v60 = vpop.f32.mrf.mxu3 }
 0x10e   : > { %v2395_v56 = vmul.f32 %v982_v9, %v2306_v18  ;;  %v754_v55 = vmul.f32 %v2341_v22, %v753_v36  ;;  %v1022_v38 = vadd.f32 0.001143296, %v1021_v25  ;;  %v810_v11 = vmul.f32 2.1237322e-06, %v2328_v45 }
 0x10f   : > { %v794_v40 = vmul.f32 %v2372_v21, %v793_v10  ;;  %v826_v33 = vadd.f32 0.112945676, %v825_v31  ;;  %v1686_v48 = vclamps-f32 %v725_v46, 1.0  ;;  %v739_v53 = vadd.f32 1.1283791, %v738_v50  ;;  %v1368_v46 = vld [vmem:[%s1933_s18 + $0x18] sm:$0xff] }
 0x110   : > { %v2401_v54 = vmul.f32 0.70710677, %v2365_v61  ;;  %v848_v51 = vmul.f32 %v2387_v5, %v2387_v5  ;;  %v2406_v47 = vpop.eup %1794  ;;  %v778_v9 = vmul.f32 %v777_v30, %v2226_v59  ;;  %vm797_vm11 = vweird.f32 %v2372_v21 }
 0x111   : > { %v795_v3 = vadd.f32 %v2372_v21, %v794_v40  ;;  %v827_v37 = vmul.f32 %v826_v33, %v2328_v45  ;;  %v755_v44 = vadd.f32 %v2341_v22, %v754_v55  ;;  %vm757_vm12 = vweird.f32 %v2341_v22 }
 0x112   : > { %v800_v28 = vand.u32 2147483647, %v2339_v27  ;;  %v802_v20 = vand.u32 2147483648, %v2339_v27  ;;  %vm796_vm13 = vweird.f32 %v2339_v27  ;;  %v811_v59 = vadd.f32 0.00028619796, %v810_v11 }
 0x113   : > { %v828_v24 = vadd.f32 0.4994258, %v827_v37  ;;  %v2419_v36 = vmin.f32 %v848_v51, 16.0  ;;  %v1133_v15 = vadd.f32 1.0, %v1686_v48  ;;  %vm756_vm14 = vweird.f32 %v2298_v43  ;;  %vm2426_vm15 = vmor %vm796_vm13, %vm797_vm11 }
 0x114   : > { %1388 = vperm.xlu0 %1775, %v1366_v13   ;;  %v760_v26 = vand.u32 2147483647, %v2298_v43  ;;  %v762_v25 = vand.u32 2147483648, %v2298_v43  ;;  %v779_v27 = vadd.f32 1.1283791, %v778_v9  ;;  %v799_v50 = vsel %vm2426_vm15, %v2372_v21, %v795_v3  ;;  %vm2440_vm1 = vmor %vm756_vm14, %vm757_vm12 }
 0x115   : > { %v829_v7 = vmul.f32 %v828_v24, %v2328_v45  ;;  %v2436_v30 = vmul.f32 0.70710677, %v2416_v60  ;;  %1398 = vperm.xlu1 %1776, %v1368_v46   ;;  %v1023_v10 = vmul.f32 %v1022_v38, %v2363_v57  ;;  %v803_v31 = vor.u32 1.1754944e-38, %v802_v20 }
 0x116   : > { %v850_v55 = vmul.f32 2.1237322e-06, %v2419_v36  ;;  %v861_v40 = vmul.f32 3.8918573e-05, %v2419_v36  ;;  %v759_v21 = vsel %vm2440_vm1, %v2341_v22, %v755_v44  ;;  %vm801_vm3 = vcmp.eq.f32.partialorder %v800_v28, 8.507059e+37 }
 0x117   : > { %v812_v11 = vmul.f32 %v811_v59, %v2328_v45  ;;  %v2451_v33 = vadd.f32 1.0, %v829_v7  ;;  %v1149_v48 = vmul.f32 %v1133_v15, %v461_v0  ;;  %v763_v51 = vor.u32 1.1754944e-38, %v762_v25 }
 0x118   : > { %v804_v13 = vsel %vm801_vm3, %v803_v31, %v799_v50  ;;  %v1048_v38 = vmul.f32 %v2401_v54, %v2401_v54  ;;  %vm761_vm4 = vcmp.eq.f32.partialorder %v760_v26, 8.507059e+37  ;;  %v780_v9 = vmul.f32 %v779_v27, %v2198_v23 }
 0x119   : > { %v1088_v3 = vmul.f32 %v2436_v30, %v2436_v30  ;;  %v862_v37 = vadd.f32 0.001143296, %v861_v40  ;;  %v933_v20 = vadd.f32 0.0036580483, %v932_v16  ;;  %v764_v22 = vsel %vm761_vm4, %v763_v51, %v759_v21 }
 0x11a   : > { %1796 = vrcp.f32 %v2451_v33  ;;  %v851_v44 = vadd.f32 0.00028619796, %v850_v55  ;;  %v1148_v28 = vmul.f32 %v1132_v32, %v2185_v1  ;;  %v740_v0 = vmul.f32 %v739_v53, %v2102_v12 }
 0x11b   : > { %v805_v59 = vmul.f32 %v804_v13, %v780_v9  ;;  %v813_v24 = vadd.f32 0.0036580483, %v812_v11  ;;  %v949_v15 = vmul.f32 %v2392_v34, %v2203_v17  ;;  %v984_v23 = vadd.f32 0.014752088, %v2395_v56 }
 0x11c   : > { %v1024_v26 = vadd.f32 0.014752088, %v1023_v10  ;;  %v2464_v25 = vmin.f32 %v1048_v38, 16.0  ;;  %v765_v4 = vmul.f32 %v764_v22, %v740_v0  ;;  %v2466_v16 = vmin.f32 %v1088_v3, 16.0 }
 0x11d   : > { %v863_v46 = vmul.f32 %v862_v37, %v2419_v36  ;;  %v1162_v27 = vpack.c.bf16 %v1149_v48, %v1148_v28  ;;  %v912_v1 = vmul.f32 %v2406_v47, %v2290_v62  ;;  %v934_v12 = vmul.f32 %v933_v20, %v2203_v17 }
 0x11e   : > { %v852_v32 = vmul.f32 %v851_v44, %v2419_v36  ;;  %v920_v34 = vand.u32 2147483647, %v2290_v62  ;;  %v1688_v53 = vclamps-f32 %v805_v59, 1.0  ;;  %v814_v56 = vmul.f32 %v813_v24, %v2328_v45 }
 0x11f   : > { %v864_v50 = vadd.f32 0.014752088, %v863_v46  ;;  %1715 = vmatmul.msk.bf16.gmra.mxu1 %vm1200_vm2, %v1162_v27  ;;  %v899_v43 = vadd.f32 1.1283791, %v2377_v39  ;;  %v2479_v10 = vadd.f32 1.0, %v949_v15  ;;  %v985_v31 = vmul.f32 %v984_v23, %v2306_v18 }
 0x120   : > { %v2476_v7 = vpop.eup %1796  ;;  %v1061_v55 = vmul.f32 3.8918573e-05, %v2464_v25  ;;  %v1687_v40 = vclamps-f32 %v765_v4, 1.0  ;;  %v1025_v21 = vmul.f32 %v1024_v26, %v2363_v57  ;;  %v1101_v11 = vmul.f32 3.8918573e-05, %v2466_v16 }
 0x121   : > { %v865_v48 = vmul.f32 %v864_v50, %v2419_v36  ;;  %v913_v51 = vsub.f32 1.0, %v912_v1  ;;  %v935_v13 = vadd.f32 0.05243302, %v934_v12  ;;  %v853_v38 = vadd.f32 0.0036580483, %v852_v32 }
 0x122   : > { %v970_v9 = vmul.f32 2.1237322e-06, %v2306_v18  ;;  %v1135_v3 = vadd.f32 1.0, %v1688_v53  ;;  %v815_v39 = vadd.f32 0.05243302, %v814_v56  ;;  %v832_v37 = vmul.f32 %v2476_v7, %v2451_v33 }
 0x123   : > { %1798 = vrcp.f32 %v2479_v10  ;;  %v986_v20 = vadd.f32 0.112945676, %v985_v31  ;;  %v1062_v22 = vadd.f32 0.001143296, %v1061_v55  ;;  %v866_v44 = vadd.f32 0.112945676, %v865_v48 }
 0x124   : > { %v1134_v28 = vadd.f32 1.0, %v1687_v40  ;;  %v1026_v0 = vadd.f32 0.112945676, %v1025_v21  ;;  %v463_v59 = vmul.f32 0.5, %v2187_v2  ;;  %v1102_v24 = vadd.f32 0.001143296, %v1101_v11 }
 0x125   : > { %v914_v15 = vmul.f32 %v2406_v47, %v913_v51  ;;  %v462_v23 = vmul.f32 0.5, %v2084_v8  ;;  %v854_v26 = vmul.f32 %v853_v38, %v2419_v36  ;;  %v867_v4 = vmul.f32 %v866_v44, %v2419_v36  ;;  %v1371_v51 = vld [vmem:[%s1933_s18 + $0x30] sm:$0xff]  ;;  %v1372_v38 = vld [vmem:[%s1933_s18 + $0x38] sm:$0xff] }
 0x126   : > { %v936_v46 = vmul.f32 %v935_v13, %v2203_v17  ;;  %v1151_v27 = vmul.f32 %v1135_v3, %v463_v59  ;;  %v816_v1 = vmul.f32 %v815_v39, %v2328_v45  ;;  %v833_v12 = vsub.f32 1.0, %v832_v37  ;;  %v1369_v13 = vld [vmem:[%s1933_s18 + $0x20] sm:$0xff]  ;;  %1413 = vperm.xlu0 %1775, %v1371_v51   ;;  %1418 = vperm.xlu1 %1776, %v1372_v38  }
 0x127   : > { %v971_v32 = vadd.f32 0.00028619796, %v970_v9  ;;  %v987_v2 = vmul.f32 %v986_v20, %v2306_v18  ;;  %v1063_v53 = vmul.f32 %v1062_v22, %v2464_v25  ;;  %v868_v56 = vadd.f32 0.4994258, %v867_v4  ;;  %1403 = vperm.xlu2 %1777, %v1369_v13  }
 0x128   : > { %v1150_v8 = vmul.f32 %v1134_v28, %v462_v23  ;;  %v1010_v50 = vmul.f32 2.1237322e-06, %v2363_v57  ;;  %v1027_v31 = vmul.f32 %v1026_v0, %v2363_v57  ;;  %v1103_v55 = vmul.f32 %v1102_v24, %v2466_v16 }
 0x129   : > { %v2502_v40 = vpop.eup %1798  ;;  %v2505_v21 = vmul.f32 %v899_v43, %v2024_v52  ;;  %vm916_vm5 = vweird.f32 %v2290_v62  ;;  %v922_v11 = vand.u32 2147483648, %v2290_v62  ;;  %v855_v48 = vadd.f32 0.05243302, %v854_v26 }
 0x12a   : > { %v817_v9 = vadd.f32 0.18741608, %v816_v1  ;;  %v834_v3 = vmul.f32 %v2476_v7, %v833_v12  ;;  %v869_v39 = vmul.f32 %v868_v56, %v2419_v36  ;;  %v1163_v37 = vpack.c.bf16 %v1151_v27, %v1150_v8 }
 0x12b   : > { %vm917_vm6 = vweird.f32 %v2406_v47  ;;  %v937_v52 = vadd.f32 0.18741608, %v936_v46  ;;  %v988_v43 = vadd.f32 0.4994258, %v987_v2  ;;  %v1064_v20 = vadd.f32 0.014752088, %v1063_v53 }
 0x12c   : > { %v2516_v22 = vadd.f32 %v2406_v47, %v914_v15  ;;  %v1028_v44 = vadd.f32 0.4994258, %v1027_v31  ;;  %v1104_v28 = vadd.f32 0.014752088, %v1103_v55  ;;  %v2518_v0 = vadd.f32 1.0, %v869_v39  ;;  %vm2526_vm7 = vmor %vm916_vm5, %vm917_vm6 }
 0x12d   : > { %v952_v59 = vmul.f32 %v2502_v40, %v2479_v10  ;;  %v972_v24 = vmul.f32 %v971_v32, %v2306_v18  ;;  %v1011_v23 = vadd.f32 0.00028619796, %v1010_v50  ;;  %v856_v26 = vmul.f32 %v855_v48, %v2419_v36 }
 0x12e   : > { %v818_v15 = vmul.f32 %v817_v9, %v2328_v45  ;;  %v835_v46 = vadd.f32 %v2476_v7, %v834_v3  ;;  %vm837_vm8 = vweird.f32 %v2476_v7  ;;  %1800 = vrcp.f32 %v2518_v0 }
 0x12f   : > { %1716 = vmatmul.msk.bf16.gmra.mxu1 %vm1200_vm2, %v1163_v37  ;;  %v938_v27 = vmul.f32 %v937_v52, %v2203_v17  ;;  %v989_v1 = vmul.f32 %v988_v43, %v2306_v18  ;;  %v1065_v12 = vmul.f32 %v1064_v20, %v2464_v25  ;;  %v842_v32 = vand.u32 2147483648, %v2451_v33 }
 0x130   : > { %v1029_v2 = vmul.f32 %v1028_v44, %v2363_v57  ;;  %vm836_vm9 = vweird.f32 %v2451_v33  ;;  %v840_v45 = vand.u32 2147483647, %v2451_v33  ;;  %v1105_v53 = vmul.f32 %v1104_v28, %v2466_v16 }
 0x131   : > { %v919_v56 = vsel %vm2526_vm7, %v2406_v47, %v2516_v22  ;;  %v2547_v17 = vor.u32 1.1754944e-38, %v922_v11  ;;  %v973_v8 = vadd.f32 0.0036580483, %v972_v24  ;;  %vm2549_vm10 = vmor %vm836_vm9, %vm837_vm8  ;;  %v857_v31 = vadd.f32 0.18741608, %v856_v26 }
 0x132   : > { %v953_v55 = vsub.f32 1.0, %v952_v59  ;;  %v1012_v48 = vmul.f32 %v1011_v23, %v2363_v57  ;;  %v819_v51 = vadd.f32 1.1283791, %v818_v15  ;;  %v839_v33 = vsel %vm2549_vm10, %v2476_v7, %v835_v46 }
 0x133   : > { %v2557_v13 = vadd.f32 1.1283791, %v938_v27  ;;  %v2559_v38 = vadd.f32 1.0, %v989_v1  ;;  %v1066_v11 = vadd.f32 0.112945676, %v1065_v12  ;;  %v843_v9 = vor.u32 1.1754944e-38, %v842_v32 }
 0x134   : > { %v1801_v3 = vpop.eup %1800  ;;  %vm956_vm11 = vweird.f32 %v2479_v10  ;;  %v2562_v39 = vadd.f32 1.0, %v1029_v2  ;;  %vm841_vm12 = vcmp.eq.f32.partialorder %v840_v45, 8.507059e+37  ;;  %v1106_v37 = vadd.f32 0.112945676, %v1105_v53  ;;  %v1374_v12 = vld [vmem:[%s1933_s18 + $0x48] sm:$0xff] }
 0x135   : > { %vm2566_vm13 = vcmp.eq.f32.partialorder %v920_v34, 8.507059e+37  ;;  %v960_v7 = vand.u32 2147483647, %v2479_v10  ;;  %v844_v43 = vsel %vm841_vm12, %v843_v9, %v839_v33  ;;  %v858_v20 = vmul.f32 %v857_v31, %v2419_v36  ;;  %1428 = vperm.xlu0 %1775, %v1374_v12  }
 0x136   : > { %v872_v44 = vmul.f32 %v1801_v3, %v2518_v0  ;;  %v954_v28 = vmul.f32 %v2502_v40, %v953_v55  ;;  %v974_v59 = vmul.f32 %v973_v8, %v2306_v18  ;;  %v1013_v24 = vadd.f32 0.0036580483, %v1012_v48 }
 0x137   : > { %v820_v62 = vmul.f32 %v819_v51, %v2302_v29  ;;  %vm957_vm14 = vweird.f32 %v2502_v40  ;;  %1802 = vrcp.f32 %v2559_v38  ;;  %v1067_v34 = vmul.f32 %v1066_v11, %v2464_v25  ;;  %v1370_v29 = vld [vmem:[%s1933_s18 + $0x28] sm:$0xff] }
 0x138   : > { %v873_v23 = vsub.f32 1.0, %v872_v44  ;;  %1804 = vrcp.f32 %v2562_v39  ;;  %v1107_v26 = vmul.f32 %v1106_v37, %v2466_v16  ;;  %v882_v15 = vand.u32 2147483648, %v2518_v0  ;;  %1408 = vperm.xlu2 %1777, %v1370_v29   ;;  %vm2593_vm1 = vmor %vm956_vm11, %vm957_vm14 }
 0x139   : > { %v845_v36 = vmul.f32 %v844_v43, %v820_v62  ;;  %v859_v46 = vadd.f32 1.1283791, %v858_v20  ;;  %vm877_vm15 = vweird.f32 %v1801_v3  ;;  %v880_v1 = vand.u32 2147483647, %v2518_v0 }
 0x13a   : > { %v874_v27 = vmul.f32 %v1801_v3, %v873_v23  ;;  %v955_v32 = vadd.f32 %v2502_v40, %v954_v28  ;;  %v962_v2 = vand.u32 2147483648, %v2479_v10  ;;  %v1014_v45 = vmul.f32 %v1013_v24, %v2363_v57 }
 0x13b   : > { %v1050_v53 = vmul.f32 2.1237322e-06, %v2464_v25  ;;  %v1068_v50 = vadd.f32 0.4994258, %v1067_v34  ;;  %v1090_v31 = vmul.f32 2.1237322e-06, %v2466_v16  ;;  %vm876_vm3 = vweird.f32 %v2518_v0 }
 0x13c   : > { %v875_v55 = vadd.f32 %v1801_v3, %v874_v27  ;;  %vm2599_vm4 = vcmp.eq.f32.partialorder %v960_v7, 8.507059e+37  ;;  %v975_v51 = vadd.f32 0.05243302, %v974_v59  ;;  %v1108_v33 = vadd.f32 0.4994258, %v1107_v26  ;;  %vm878_vm5 = vmor %vm876_vm3, %vm877_vm15 }
 0x13d   : > { %v883_v11 = vor.u32 1.1754944e-38, %v882_v15  ;;  %v2604_v10 = vpop.eup %1802  ;;  %v1689_v9 = vclamps-f32 %v845_v36, 1.0  ;;  %v860_v37 = vmul.f32 %v859_v46, %v2387_v5  ;;  %vm881_vm6 = vcmp.eq.f32.partialorder %v880_v1, 8.507059e+37 }
 0x13e   : > { %v879_v43 = vsel %vm878_vm5, %v1801_v3, %v875_v55  ;;  %v2607_v20 = vpop.eup %1804  ;;  %v963_v44 = vor.u32 1.1754944e-38, %v962_v2  ;;  %v1015_v0 = vadd.f32 0.05243302, %v1014_v45  ;;  %v1051_v7 = vadd.f32 0.00028619796, %v1050_v53 }
 0x13f   : > { %v884_v28 = vsel %vm881_vm6, %v883_v11, %v879_v43  ;;  %v959_v59 = vsel %vm2593_vm1, %v2502_v40, %v955_v32  ;;  %v1069_v24 = vmul.f32 %v1068_v50, %v2464_v25  ;;  %v1091_v62 = vadd.f32 0.00028619796, %v1090_v31  ;;  %v1375_v11 = vld [vmem:[%s1933_s18 + $0x50] sm:$0xff] }
 0x140   : > { %v885_v34 = vmul.f32 %v884_v28, %v860_v37  ;;  %v924_v5 = vsel %vm2566_vm13, %v2547_v17, %v919_v56  ;;  %v976_v3 = vmul.f32 %v975_v51, %v2306_v18  ;;  %v992_v23 = vmul.f32 %v2604_v10, %v2559_v38  ;;  %1433 = vperm.xlu1 %1776, %v1375_v11  }
 0x141   : > { %v1109_v40 = vmul.f32 %v1108_v33, %v2466_v16  ;;  %v940_v36 = vmul.f32 %v2557_v13, %v2160_v35  ;;  %v1032_v4 = vmul.f32 %v2607_v20, %v2562_v39  ;;  %v1136_v26 = vadd.f32 1.0, %v1689_v9  ;;  %v1377_v33 = vld [vmem:[%s1933_s18 + $0x60] sm:$0xff] }
 0x142   : > { %v1690_v15 = vclamps-f32 %v885_v34, 1.0  ;;  %v964_v47 = vsel %vm2599_vm4, %v963_v44, %v959_v59  ;;  %v1016_v22 = vmul.f32 %v1015_v0, %v2363_v57  ;;  %v1052_v56 = vmul.f32 %v1051_v7, %v2464_v25  ;;  %1443 = vperm.xlu0 %1775, %v1377_v33  }
 0x143   : > { %v464_v17 = vmul.f32 0.5, %v2284_v19  ;;  %v2634_v52 = vadd.f32 1.0, %v1069_v24  ;;  %v1092_v46 = vmul.f32 %v1091_v62, %v2466_v16  ;;  %v465_v35 = vmul.f32 0.5, %v2370_v14 }
 0x144   : > { %v1137_v13 = vadd.f32 1.0, %v1690_v15  ;;  %v925_v27 = vmul.f32 %v924_v5, %v2505_v21  ;;  %v977_v1 = vadd.f32 0.18741608, %v976_v3  ;;  %v993_v29 = vsub.f32 1.0, %v992_v23  ;;  %v1380_v15 = vld [vmem:[%s1933_s18 + $0x78] sm:$0xff] }
 0x145   : > { %v2639_v12 = vadd.f32 1.0, %v1109_v40  ;;  %v965_v32 = vmul.f32 %v964_v47, %v940_v36  ;;  %v1033_v2 = vsub.f32 1.0, %v1032_v4  ;;  %v1152_v45 = vmul.f32 %v1136_v26, %v464_v17 }
 0x146   : > { %v1153_v53 = vmul.f32 %v1137_v13, %v465_v35  ;;  %v1053_v19 = vadd.f32 0.0036580483, %v1052_v56  ;;  %v1017_v8 = vadd.f32 0.18741608, %v1016_v22  ;;  %1806 = vrcp.f32 %v2634_v52 }
 0x147   : > { %v1093_v50 = vadd.f32 0.0036580483, %v1092_v46  ;;  %v994_v14 = vmul.f32 %v2604_v10, %v993_v29  ;;  %1808 = vrcp.f32 %v2639_v12  ;;  %v1691_v21 = vclamps-f32 %v925_v27, 1.0 }
 0x148   : > { %v1164_v31 = vpack.c.bf16 %v1153_v53, %v1152_v45  ;;  %v1692_v55 = vclamps-f32 %v965_v32, 1.0  ;;  %v978_v48 = vmul.f32 %v977_v1, %v2306_v18  ;;  %v1034_v51 = vmul.f32 %v2607_v20, %v1033_v2 }
 0x149   : > { %vm996_vm7 = vweird.f32 %v2559_v38  ;;  %vm997_vm8 = vweird.f32 %v2604_v10  ;;  %v1002_v9 = vand.u32 2147483648, %v2559_v38  ;;  %v1054_v37 = vmul.f32 %v1053_v19, %v2464_v25 }
 0x14a   : > { %1717 = vmatmul.msk.bf16.vlgmr.msra.gmra.mxu2 %vm1200_vm2, %v1164_v31  ;;  %v1018_v43 = vmul.f32 %v1017_v8, %v2363_v57  ;;  %vm1036_vm9 = vweird.f32 %v2562_v39  ;;  %vm1037_vm10 = vweird.f32 %v2607_v20  ;;  %v1094_v18 = vmul.f32 %v1093_v50, %v2466_v16  ;;  %vm2667_vm11 = vmor %vm996_vm7, %vm997_vm8  ;;  %1458 = vperm.xlu0 %1775, %v1380_v15   ;;  %v1373_v31 = vld [vmem:[%s1933_s18 + $0x40] sm:$0xff]  ;;  %v1376_v57 = vld [vmem:[%s1933_s18 + $0x58] sm:$0xff] }
 0x14b   : > { %v995_v44 = vadd.f32 %v2604_v10, %v994_v14  ;;  %v1000_v0 = vand.u32 2147483647, %v2559_v38  ;;  %v1042_v7 = vand.u32 2147483648, %v2562_v39  ;;  %v466_v59 = vmul.f32 0.5, %v2017_v49  ;;  %vm2680_vm12 = vmor %vm1036_vm9, %vm1037_vm10  ;;  %v1378_v14 = vld [vmem:[%s1933_s18 + $0x68] sm:$0xff]  ;;  %1423 = vperm.xlu2 %1777, %v1373_v31  }
 0x14c   : > { %v2660_v28 = vpop.eup %1806  ;;  %v1138_v24 = vadd.f32 1.0, %v1691_v21  ;;  %v1035_v62 = vadd.f32 %v2607_v20, %v1034_v51  ;;  %v1040_v34 = vand.u32 2147483647, %v2562_v39  ;;  %v467_v3 = vmul.f32 0.5, %v2144_v6  ;;  %1448 = vperm.xlu1 %1776, %v1378_v14  }
 0x14d   : > { %v2673_v5 = vpop.eup %1808  ;;  %v1139_v23 = vadd.f32 1.0, %v1692_v55  ;;  %v979_v40 = vadd.f32 1.1283791, %v978_v48  ;;  %v1055_v38 = vadd.f32 0.05243302, %v1054_v37  ;;  %v1003_v36 = vor.u32 1.1754944e-38, %v1002_v9 }
 0x14e   : > { %v1019_v4 = vadd.f32 1.1283791, %v1018_v43  ;;  %v1095_v26 = vadd.f32 0.05243302, %v1094_v18  ;;  %v999_v47 = vsel %vm2667_vm11, %v2604_v10, %v995_v44  ;;  %vm1001_vm13 = vcmp.eq.f32.partialorder %v1000_v0, 8.507059e+37 }
 0x14f   : > { %v1043_v6 = vor.u32 1.1754944e-38, %v1042_v7  ;;  %v1039_v22 = vsel %vm2680_vm12, %v2607_v20, %v1035_v62  ;;  %vm1041_vm14 = vcmp.eq.f32.partialorder %v1040_v34, 8.507059e+37  ;;  %v1072_v39 = vmul.f32 %v2660_v28, %v2634_v52 }
 0x150   : > { %v1112_v56 = vmul.f32 %v2673_v5, %v2639_v12  ;;  %v1154_v17 = vmul.f32 %v1138_v24, %v466_v59  ;;  %v980_v46 = vmul.f32 %v979_v40, %v2275_v58  ;;  %v1056_v35 = vmul.f32 %v1055_v38, %v2464_v25 }
 0x151   : > { %v1155_v10 = vmul.f32 %v1139_v23, %v467_v3  ;;  %v1004_v13 = vsel %vm1001_vm13, %v1003_v36, %v999_v47  ;;  %v1020_v27 = vmul.f32 %v1019_v4, %v2325_v63  ;;  %v1096_v20 = vmul.f32 %v1095_v26, %v2466_v16  ;;  %v1379_v26 = vld [vmem:[%s1933_s18 + $0x70] sm:$0xff] }
 0x152   : > { %v1044_v1 = vsel %vm1041_vm14, %v1043_v6, %v1039_v22  ;;  %v1073_v29 = vsub.f32 1.0, %v1072_v39  ;;  %v1113_v32 = vsub.f32 1.0, %v1112_v56  ;;  %v1005_v2 = vmul.f32 %v1004_v13, %v980_v46 }
 0x153   : > { %v1057_v45 = vadd.f32 0.18741608, %v1056_v35  ;;  %v1045_v53 = vmul.f32 %v1044_v1, %v1020_v27  ;;  %v1097_v19 = vadd.f32 0.18741608, %v1096_v20  ;;  %v1165_v8 = vpack.c.bf16 %v1155_v10, %v1154_v17  ;;  %1438 = vperm.xlu2 %1777, %v1376_v57  }
 0x154   : > { %v1074_v58 = vmul.f32 %v2660_v28, %v1073_v29  ;;  %v1114_v50 = vmul.f32 %v2673_v5, %v1113_v32  ;;  %v1693_v21 = vclamps-f32 %v1005_v2, 1.0  ;;  %vm1076_vm15 = vweird.f32 %v2634_v52 }
 0x155   : > { %v1058_v63 = vmul.f32 %v1057_v45, %v2464_v25  ;;  %vm1077_vm1 = vweird.f32 %v2660_v28  ;;  %v1694_v55 = vclamps-f32 %v1045_v53, 1.0  ;;  %v1098_v48 = vmul.f32 %v1097_v19, %v2466_v16 }
 0x156   : > { %vm1116_vm3 = vweird.f32 %v2639_v12  ;;  %vm1117_vm4 = vweird.f32 %v2673_v5  ;;  %v1082_v51 = vand.u32 2147483648, %v2634_v52  ;;  %v1122_v33 = vand.u32 2147483648, %v2639_v12  ;;  %vm2713_vm5 = vmor %vm1076_vm15, %vm1077_vm1 }
 0x157   : > { %v1075_v25 = vadd.f32 %v2660_v28, %v1074_v58  ;;  %v1080_v9 = vand.u32 2147483647, %v2634_v52  ;;  %v1115_v37 = vadd.f32 %v2673_v5, %v1114_v50  ;;  %v1120_v16 = vand.u32 2147483647, %v2639_v12  ;;  %vm2722_vm6 = vmor %vm1116_vm3, %vm1117_vm4 }
 0x158   : > { %v468_v43 = vmul.f32 0.5, %v2268_v41  ;;  %v1140_v18 = vadd.f32 1.0, %v1693_v21  ;;  %v469_v44 = vmul.f32 0.5, %v2312_v42  ;;  %v1141_v7 = vadd.f32 1.0, %v1694_v55 }
 0x159   : > { %v1059_v59 = vadd.f32 1.1283791, %v1058_v63  ;;  %v1099_v24 = vadd.f32 1.1283791, %v1098_v48  ;;  %v1083_v62 = vor.u32 1.1754944e-38, %v1082_v51  ;;  %v1123_v52 = vor.u32 1.1754944e-38, %v1122_v33 }
 0x15a   : > { %1718 = vmatmul.msk.bf16.gmra.mxu2 %vm1200_vm2, %v1165_v8  ;;  %v1079_v12 = vsel %vm2713_vm5, %v2660_v28, %v1075_v25  ;;  %vm1081_vm7 = vcmp.eq.f32.partialorder %v1080_v9, 8.507059e+37  ;;  %v1119_v41 = vsel %vm2722_vm6, %v2673_v5, %v1115_v37  ;;  %vm1121_vm8 = vcmp.eq.f32.partialorder %v1120_v16, 8.507059e+37 }
 0x15b   : > { %v1156_v42 = vmul.f32 %v1140_v18, %v468_v43  ;;  %v1157_v34 = vmul.f32 %v1141_v7, %v469_v44  ;;  %v1060_v3 = vmul.f32 %v1059_v59, %v2401_v54  ;;  %v1100_v23 = vmul.f32 %v1099_v24, %v2436_v30  ;;  %1453 = vperm.xlu2 %1777, %v1379_v26  }
 0x15c   : > { %v1084_v40 = vsel %vm1081_vm7, %v1083_v62, %v1079_v12  ;;  %v1124_v49 = vsel %vm1121_vm8, %v1123_v52, %v1119_v41  ;;  %v470_v5 = vmul.f32 0.5, %v2365_v61  ;;  %v471_v6 = vmul.f32 0.5, %v2416_v60 }
 0x15d   : > { %v1085_v38 = vmul.f32 %v1084_v40, %v1060_v3  ;;  %v1125_v36 = vmul.f32 %v1124_v49, %v1100_v23  ;;  %v1166_v4 = vpack.c.bf16 %v1157_v34, %v1156_v42 }
 0x15f   : > { %v1695_v28 = vclamps-f32 %v1085_v38, 1.0  ;;  %v1696_v15 = vclamps-f32 %v1125_v36, 1.0 }
 0x161   : > { %v1142_v47 = vadd.f32 1.0, %v1695_v28  ;;  %v1143_v54 = vadd.f32 1.0, %v1696_v15 }
 0x163   : > { %v1158_v22 = vmul.f32 %v1142_v47, %v470_v5  ;;  %v1159_v39 = vmul.f32 %v1143_v54, %v471_v6 }
 0x165   : > { %v1167_v56 = vpack.c.bf16 %v1159_v39, %v1158_v22 }
 0x16a   : > { %1719 = vmatmul.msk.bf16.gmra.mxu2 %vm1200_vm2, %v1166_v4 }
 0x173   : > { %v1234_v30 = vpop.f32.mrf.mxu1 }
 0x174   : > { %1278 = vst.msk [vmem:[#allocation2] sm:$0xff] %vm382_vm0, %v1234_v30 }
 0x17a   : > { %1720 = vmatmul.msk.bf16.gmra.mxu2 %vm1200_vm2, %v1167_v56 }
 0x17b   : > { %v1349_v17 = vld [vmem:[#allocation2] sm:$0xff]  ;;  %v1236_v46 = vpop.f32.mrf.mxu1 }
 0x17c   : > { %1279 = vst.msk [vmem:[#allocation2 + $0x8] sm:$0xff] %vm382_vm0, %v1236_v46 }
 0x17e   : > { %v1384_v35 = vpop.permute.xlu0 %1383 }
 0x17f   : > { %v1461_v61 = vmul.f32 %v1384_v35, %v1349_v17  ;;  %v1394_v20 = vpop.permute.xlu1 %1393 }
 0x181   : > { %1477 = vst.msk [vmem:[%s1938_s21] sm:$0xff] %vm382_vm0, %v1461_v61  ;;  %v1404_v8 = vpop.permute.xlu2 %1403 }
 0x183   : > { %v1350_v60 = vld [vmem:[#allocation2 + $0x8] sm:$0xff] }
 0x186   : > { %v1389_v10 = vpop.permute.xlu0 %1388 }
 0x187   : > { %v1462_v13 = vmul.f32 %v1389_v10, %v1350_v60  ;;  %v1239_v27 = vpop.f32.mrf.mxu1  ;;  %v1399_v2 = vpop.permute.xlu1 %1398 }
 0x188   : > { %1280 = vst.msk [vmem:[#allocation2 + $0x10] sm:$0xff] %vm382_vm0, %v1239_v27 }
 0x189   : > { %1478 = vst.msk [vmem:[%s1938_s21 + $0x8] sm:$0xff] %vm382_vm0, %v1462_v13 }
 0x18f   : > { %v1351_v1 = vld [vmem:[#allocation2 + $0x10] sm:$0xff]  ;;  %v1241_v29 = vpop.f32.mrf.mxu1 }
 0x190   : > { %v1463_v32 = vmul.f32 %v1394_v20, %v1351_v1  ;;  %1281 = vst.msk [vmem:[#allocation2 + $0x18] sm:$0xff] %vm382_vm0, %v1241_v29 }
 0x192   : > { %1479 = vst.msk [vmem:[%s1938_s21 + $0x10] sm:$0xff] %vm382_vm0, %v1463_v32  ;;  %v1409_v14 = vpop.permute.xlu2 %1408 }
 0x197   : > { %v1352_v45 = vld [vmem:[#allocation2 + $0x18] sm:$0xff] }
 0x198   : > { %v1464_v53 = vmul.f32 %v1399_v2, %v1352_v45  ;;  %v1414_v48 = vpop.permute.xlu0 %1413  ;;  %v1419_v11 = vpop.permute.xlu1 %1418 }
 0x19a   : > { %1480 = vst.msk [vmem:[%s1938_s21 + $0x18] sm:$0xff] %vm382_vm0, %v1464_v53 }
 0x19c   : > { %v1244_v19 = vpop.f32.mrf.mxu1 }
 0x19d   : > { %1282 = vst.msk [vmem:[#allocation2 + $0x20] sm:$0xff] %vm382_vm0, %v1244_v19 }
 0x1a4   : > { %v1353_v58 = vld [vmem:[#allocation2 + $0x20] sm:$0xff]  ;;  %v1246_v50 = vpop.f32.mrf.mxu1 }
 0x1a5   : > { %v1465_v31 = vmul.f32 %v1404_v8, %v1353_v58  ;;  %1283 = vst.msk [vmem:[#allocation2 + $0x28] sm:$0xff] %vm382_vm0, %v1246_v50  ;;  %v1424_v43 = vpop.permute.xlu2 %1423 }
 0x1a7   : > { %1481 = vst.msk [vmem:[%s1938_s21 + $0x20] sm:$0xff] %vm382_vm0, %v1465_v31  ;;  %v1429_v7 = vpop.permute.xlu0 %1428 }
 0x1ac   : > { %v1354_v21 = vld [vmem:[#allocation2 + $0x28] sm:$0xff]  ;;  %v1249_v63 = vpop.f32.mrf.mxu1 }
 0x1ad   : > { %v1466_v55 = vmul.f32 %v1409_v14, %v1354_v21  ;;  %1284 = vst.msk [vmem:[#allocation2 + $0x30] sm:$0xff] %vm382_vm0, %v1249_v63  ;;  %v1439_v42 = vpop.permute.xlu2 %1438 }
 0x1af   : > { %1482 = vst.msk [vmem:[%s1938_s21 + $0x28] sm:$0xff] %vm382_vm0, %v1466_v55 }
 0x1b2   : > { %v1434_v62 = vpop.permute.xlu1 %1433 }
 0x1b4   : > { %v1355_v51 = vld [vmem:[#allocation2 + $0x30] sm:$0xff]  ;;  %v1251_v33 = vpop.f32.mrf.mxu1  ;;  %v1444_v40 = vpop.permute.xlu0 %1443 }
 0x1b5   : > { %v1467_v25 = vmul.f32 %v1414_v48, %v1355_v51  ;;  %1285 = vst.msk [vmem:[#allocation2 + $0x38] sm:$0xff] %vm382_vm0, %v1251_v33  ;;  %v1454_v5 = vpop.permute.xlu2 %1453 }
 0x1b7   : > { %1483 = vst.msk [vmem:[%s1938_s21 + $0x30] sm:$0xff] %vm382_vm0, %v1467_v25 }
 0x1bc   : > { %v1356_v9 = vld [vmem:[#allocation2 + $0x38] sm:$0xff]  ;;  %v1459_v30 = vpop.permute.xlu0 %1458 }
 0x1bd   : > { %v1468_v37 = vmul.f32 %v1419_v11, %v1356_v9 }
 0x1be   : > { %v1449_v4 = vpop.permute.xlu1 %1448 }
 0x1bf   : > { %1484 = vst.msk [vmem:[%s1938_s21 + $0x38] sm:$0xff] %vm382_vm0, %v1468_v37 }
 0x1cd   : > { %v1254_v16 = vpop.f32.mrf.mxu2 }
 0x1ce   : > { %1286 = vst.msk [vmem:[#allocation2 + $0x40] sm:$0xff] %vm382_vm0, %v1254_v16 }
 0x1d5   : > { %v1357_v18 = vld [vmem:[#allocation2 + $0x40] sm:$0xff]  ;;  %v1256_v44 = vpop.f32.mrf.mxu2 }
 0x1d6   : > { %v1469_v0 = vmul.f32 %v1424_v43, %v1357_v18  ;;  %1287 = vst.msk [vmem:[#allocation2 + $0x48] sm:$0xff] %vm382_vm0, %v1256_v44 }
 0x1d8   : > { %1485 = vst.msk [vmem:[%s1938_s21 + $0x40] sm:$0xff] %vm382_vm0, %v1469_v0 }
 0x1dd   : > { %v1358_v59 = vld [vmem:[#allocation2 + $0x48] sm:$0xff]  ;;  %v1259_v24 = vpop.f32.mrf.mxu2 }
 0x1de   : > { %v1470_v57 = vmul.f32 %v1429_v7, %v1358_v59  ;;  %1288 = vst.msk [vmem:[#allocation2 + $0x50] sm:$0xff] %vm382_vm0, %v1259_v24 }
 0x1e0   : > { %1486 = vst.msk [vmem:[%s1938_s21 + $0x48] sm:$0xff] %vm382_vm0, %v1470_v57 }
 0x1e5   : > { %v1359_v52 = vld [vmem:[#allocation2 + $0x50] sm:$0xff]  ;;  %v1261_v12 = vpop.f32.mrf.mxu2 }
 0x1e6   : > { %v1471_v41 = vmul.f32 %v1434_v62, %v1359_v52  ;;  %1289 = vst.msk [vmem:[#allocation2 + $0x58] sm:$0xff] %vm382_vm0, %v1261_v12 }
 0x1e8   : > { %1487 = vst.msk [vmem:[%s1938_s21 + $0x50] sm:$0xff] %vm382_vm0, %v1471_v41 }
 0x1ed   : > { %v1360_v34 = vld [vmem:[#allocation2 + $0x58] sm:$0xff]  ;;  %v1264_v3 = vpop.f32.mrf.mxu2 }
 0x1ee   : > { %v1472_v23 = vmul.f32 %v1439_v42, %v1360_v34  ;;  %1290 = vst.msk [vmem:[#allocation2 + $0x60] sm:$0xff] %vm382_vm0, %v1264_v3 }
 0x1f0   : > { %1488 = vst.msk [vmem:[%s1938_s21 + $0x58] sm:$0xff] %vm382_vm0, %v1472_v23 }
 0x1f5   : > { %v1361_v49 = vld [vmem:[#allocation2 + $0x60] sm:$0xff]  ;;  %v1266_v38 = vpop.f32.mrf.mxu2 }
 0x1f6   : > { %v1473_v36 = vmul.f32 %v1444_v40, %v1361_v49  ;;  %1291 = vst.msk [vmem:[#allocation2 + $0x68] sm:$0xff] %vm382_vm0, %v1266_v38 }
 0x1f8   : > { %1489 = vst.msk [vmem:[%s1938_s21 + $0x60] sm:$0xff] %vm382_vm0, %v1473_v36 }
 0x1fd   : > { %v1362_v26 = vld [vmem:[#allocation2 + $0x68] sm:$0xff]  ;;  %v1269_v28 = vpop.f32.mrf.mxu2 }
 0x1fe   : > { %v1474_v15 = vmul.f32 %v1449_v4, %v1362_v26  ;;  %1292 = vst.msk [vmem:[#allocation2 + $0x70] sm:$0xff] %vm382_vm0, %v1269_v28 }
 0x200   : > { %1490 = vst.msk [vmem:[%s1938_s21 + $0x68] sm:$0xff] %vm382_vm0, %v1474_v15 }
 0x205   : > { %v1363_v47 = vld [vmem:[#allocation2 + $0x70] sm:$0xff]  ;;  %v1271_v6 = vpop.f32.mrf.mxu2 }
 0x206   : > { %v1475_v54 = vmul.f32 %v1454_v5, %v1363_v47  ;;  %1293 = vst.msk [vmem:[#allocation2 + $0x78] sm:$0xff] %vm382_vm0, %v1271_v6 }
 0x208   : > { %1491 = vst.msk [vmem:[%s1938_s21 + $0x70] sm:$0xff] %vm382_vm0, %v1475_v54 }
 0x20d   : > { %v1364_v22 = vld [vmem:[#allocation2 + $0x78] sm:$0xff] }
 0x20e   : > { %v1476_v39 = vmul.f32 %v1459_v30, %v1364_v22 }
 0x210   : > { %1492 = vst.msk [vmem:[%s1938_s21 + $0x78] sm:$0xff] %vm382_vm0, %v1476_v39 }
 0x211 PF: > { %1498 = sbr.rel (!%p1632_p7) target bundleno = 546 (0x222), region = 56  ;;  %vm1499_vm2 = vcmask (%p1632_p7), 261120   ;;  %v1863_v56 = vmov (%p1632_p7), 0.0  }
 0x212   : > { %1500 = vst.msk [vmem:[%s1938_s21] sm:$0xff] (%p1632_p7), %vm1499_vm2, %v1863_v56 }
 0x213   : > { %1501 = vst.msk [vmem:[%s1938_s21 + $0x8] sm:$0xff] (%p1632_p7), %vm1499_vm2, %v1863_v56 }
 0x214   : > { %1502 = vst.msk [vmem:[%s1938_s21 + $0x10] sm:$0xff] (%p1632_p7), %vm1499_vm2, %v1863_v56 }
 0x215   : > { %1503 = vst.msk [vmem:[%s1938_s21 + $0x18] sm:$0xff] (%p1632_p7), %vm1499_vm2, %v1863_v56 }
 0x216   : > { %1504 = vst.msk [vmem:[%s1938_s21 + $0x20] sm:$0xff] %vm1499_vm2, %v1863_v56 }
 0x217   : > { %1505 = vst.msk [vmem:[%s1938_s21 + $0x28] sm:$0xff] %vm1499_vm2, %v1863_v56 }
 0x218   : > { %1506 = vst.msk [vmem:[%s1938_s21 + $0x30] sm:$0xff] %vm1499_vm2, %v1863_v56 }
 0x219   : > { %1507 = vst.msk [vmem:[%s1938_s21 + $0x38] sm:$0xff] %vm1499_vm2, %v1863_v56 }
 0x21a   : > { %1508 = vst.msk [vmem:[%s1938_s21 + $0x40] sm:$0xff] %vm1499_vm2, %v1863_v56 }
 0x21b   : > { %1509 = vst.msk [vmem:[%s1938_s21 + $0x48] sm:$0xff] %vm1499_vm2, %v1863_v56 }
 0x21c   : > { %1510 = vst.msk [vmem:[%s1938_s21 + $0x50] sm:$0xff] %vm1499_vm2, %v1863_v56 }
 0x21d   : > { %1511 = vst.msk [vmem:[%s1938_s21 + $0x58] sm:$0xff] %vm1499_vm2, %v1863_v56 }
 0x21e   : > { %1512 = vst.msk [vmem:[%s1938_s21 + $0x60] sm:$0xff] %vm1499_vm2, %v1863_v56 }
 0x21f   : > { %1513 = vst.msk [vmem:[%s1938_s21 + $0x68] sm:$0xff] %vm1499_vm2, %v1863_v56 }
 0x220   : > { %1514 = vst.msk [vmem:[%s1938_s21 + $0x70] sm:$0xff] %vm1499_vm2, %v1863_v56 }
 0x221   : > { %1515 = vst.msk [vmem:[%s1938_s21 + $0x78] sm:$0xff] %vm1499_vm2, %v1863_v56 }
 0x222 PF: > { %s29_s7 = sadd.s32 1, %s1858_s7   ;;  %s2876_s29 = smov %s1854_s30 }
 0x223   : > { %p26_p8 = scmp.ge.s32.totalorder %s29_s7, 6   ;;  %s2877_s30 = smov %s2879_s0 }
 0x225   :  { %28 = sbr.rel (!%p26_p8) target bundleno = 9 (0x9), region = 95 }

</bundles_post_ra>
